<compile_context>
chip_gen: v7x
topology: tpu7x:2x2x1
jax: 0.10.0
libtpu: 0.0.40
codegen_flags: <defaults>
</compile_context>

<pallas_src>
import jax
import jax.numpy as jnp
from jax.experimental import pallas as pl
from jax.experimental.pallas import tpu as pltpu

# ------------------------- configuration (small, synthetic) -------------------
N_WAY = 2
N_SUPPORT = 2
N_QUERY = 3
IMG_C, IMG_H, IMG_W = 3, 16, 16
WORD_DIM = 16          # attribute dim (small stand-in for 312)
HIDDEN = 300           # hardcoded hidden width in AM3.transformer
FEAT_DIM = 32          # backbone final_feat_dim
KH = KW = 3            # synthetic backbone conv kernel
LAMBDA_CONST = 0.85    # forward() uses a constant 0.85 mixing coefficient

HW = IMG_H * IMG_W                       # 256 (lane-friendly)
N_IMG = N_WAY * (N_SUPPORT + N_QUERY)    # 10
K_RAW = IMG_C * KH * KW                  # 27 — fed unpadded (full-array block is legal)
HIDDEN_PAD = 384                         # 300 -> 384 (multiple of 128)
FEAT_PAD = 128                           # lane-dense output width


# ------------------------- fused Pallas kernel --------------------------------
def _am3_kernel(patch_ref, wc_ref, bc_ref,
                attr_ref, w1_ref, b1_ref, w2_ref, b2_ref,
                z_ref, proj_ref):
    # ---- image branch: im2col conv as one dense bf16 MXU matmul, f32 accumulate ----
    y = jnp.dot(patch_ref[...], wc_ref[...], preferred_element_type=jnp.float32)
    y = jnp.maximum(y + bc_ref[...], 0.0)                      # conv3x3 -> ReLU (f32)

    # Global average pool over HW per image: the reshape only splits the sublane dim at
    # a 256-row boundary (no (8,128) tile crossing, free); the reduce uses the idle XLU.
    z_ref[...] = jnp.mean(y.reshape(N_IMG, HW, FEAT_PAD), axis=1)

    # ---- attribute MLP branch (fused into the same call) ----
    h = jnp.dot(attr_ref[...], w1_ref[...], preferred_element_type=jnp.float32)
    h = jnp.maximum(h + b1_ref[...], 0.0)                      # Linear -> ReLU (f32)
    # TODO(synk): nn.Dropout(1 - mlp_dropout) is identity at inference; training-mode
    #             dropout masking (pltpu.prng_seed / prng_random_bits) not implemented.
    proj_ref[...] = (jnp.dot(h.astype(jnp.bfloat16), w2_ref[...],
                             preferred_element_type=jnp.float32) + b2_ref[...])


def _am3_pallas(patches, wc_p, bc_p, attr, w1_p, b1_p, w2_p, b2_p):
    operands = (patches, wc_p, bc_p, attr, w1_p, b1_p, w2_p, b2_p)
    flops = 2 * (N_IMG * HW * K_RAW * FEAT_PAD          # conv-as-matmul
                 + N_WAY * WORD_DIM * HIDDEN_PAD        # attr Linear 1
                 + N_WAY * HIDDEN_PAD * FEAT_PAD)       # attr Linear 2
    bytes_accessed = (sum(int(x.size) * x.dtype.itemsize for x in operands)
                      + (N_IMG + N_WAY) * FEAT_PAD * 4)
    vmem = lambda: pl.BlockSpec(memory_space=pltpu.MemorySpace.VMEM)
    return pl.pallas_call(
        _am3_kernel,
        out_shape=(jax.ShapeDtypeStruct((N_IMG, FEAT_PAD), jnp.float32),
                   jax.ShapeDtypeStruct((N_WAY, FEAT_PAD), jnp.float32)),
        in_specs=[vmem() for _ in range(len(operands))],
        out_specs=(vmem(), vmem()),
        cost_estimate=pl.CostEstimate(flops=flops, transcendentals=0,
                                      bytes_accessed=bytes_accessed),
    )(*operands)


# ------------------------- one-time prep (hoisted out of forward) --------------
def prepare_params(params):
    """Pad + cast weight slabs once at parameter-load time (not per forward)."""
    w1, b1, w2, b2, wc, bc = params
    w1_p = (jnp.zeros((WORD_DIM, HIDDEN_PAD), jnp.float32)
            .at[:, :HIDDEN].set(w1).astype(jnp.bfloat16))
    b1_p = jnp.zeros((1, HIDDEN_PAD), jnp.float32).at[:, :HIDDEN].set(b1)
    w2_p = (jnp.zeros((HIDDEN_PAD, FEAT_PAD), jnp.float32)
            .at[:HIDDEN, :FEAT_DIM].set(w2).astype(jnp.bfloat16))
    b2_p = jnp.zeros((1, FEAT_PAD), jnp.float32).at[:, :FEAT_DIM].set(b2)
    wc_p = (jnp.zeros((K_RAW, FEAT_PAD), jnp.float32)
            .at[:, :FEAT_DIM].set(wc).astype(jnp.bfloat16))
    bc_p = jnp.zeros((1, FEAT_PAD), jnp.float32).at[:, :FEAT_DIM].set(bc)
    return (w1_p, b1_p, w2_p, b2_p, wc_p, bc_p)


def prepare_image(img_nchw):
    """One-time NCHW -> NHWC relayout at data-prep time (not per forward)."""
    return jnp.transpose(img_nchw, (0, 2, 3, 1))


def _extract_patches(img_nhwc):
    # Channels-last im2col: flattened result is already (N*H*W, C*KH*KW), no relayout.
    patches = jax.lax.conv_general_dilated_patches(
        img_nhwc, filter_shape=(KH, KW), window_strides=(1, 1), padding="SAME",
        dimension_numbers=("NHWC", "HWIO", "NHWC"))            # (N, H, W, C*KH*KW)
    return patches.reshape(N_IMG * HW, K_RAW)


# ------------------------- forward ---------------------------------------------
@jax.jit
def am3_forward(img_nhwc, attr_feat, prepared):
    """AM3.forward: returns (z_all, lambda_c, attr_proj)."""
    w1_p, b1_p, w2_p, b2_p, wc_p, bc_p = prepared
    patches = _extract_patches(img_nhwc).astype(jnp.bfloat16)  # (N*HW, 27) bf16
    attr_bf = attr_feat.astype(jnp.bfloat16)
    z_pad, proj_pad = _am3_pallas(patches, wc_p, bc_p, attr_bf,
                                  w1_p, b1_p, w2_p, b2_p)
    z_all = z_pad[:, :FEAT_DIM]
    attr_proj = proj_pad[:, :FEAT_DIM]
    lambda_c = jnp.full((attr_feat.shape[0], 1), LAMBDA_CONST, jnp.float32)
    return z_all, lambda_c, attr_proj


# ------------------------- pure-JAX reference (f32) -----------------------------
def _reference_forward(img_nhwc, attr, params):
    w1, b1, w2, b2, wc, bc = params
    h = jnp.maximum(attr @ w1 + b1, 0.0)
    attr_proj = h @ w2 + b2
    lambda_c = jnp.full((attr.shape[0], 1), LAMBDA_CONST, jnp.float32)
    p = _extract_patches(img_nhwc)                              # (N*HW, 27) f32
    y = jnp.maximum(p @ wc + bc, 0.0)
    z_all = jnp.mean(y.reshape(N_IMG, HW, FEAT_DIM), axis=1)
    return z_all, lambda_c, attr_proj


# ------------------------- main -------------------------------------------------
if __name__ == "__main__":
    key = jax.random.PRNGKey(0)
    k_img, k_attr, k1, k2, k3, k4, k5, k6 = jax.random.split(key, 8)

    img_feat = jax.random.normal(k_img, (N_IMG, IMG_C, IMG_H, IMG_W), jnp.float32)
    attr_feat = jax.random.normal(k_attr, (N_WAY, WORD_DIM), jnp.float32)

    # Deterministic synthetic parameters (no checkpoint loading).
    w1 = jax.random.normal(k1, (WORD_DIM, HIDDEN), jnp.float32) * 0.05
    b1 = jax.random.normal(k2, (HIDDEN,), jnp.float32) * 0.05
    w2 = jax.random.normal(k3, (HIDDEN, FEAT_DIM), jnp.float32) * 0.05
    b2 = jax.random.normal(k4, (FEAT_DIM,), jnp.float32) * 0.05
    wc = jax.random.normal(k5, (K_RAW, FEAT_DIM), jnp.float32) * 0.05
    bc = jax.random.normal(k6, (FEAT_DIM,), jnp.float32) * 0.05
    params = (w1, b1, w2, b2, wc, bc)

    # One-time prep (outside the per-forward path, per perf review).
    prepared = prepare_params(params)
    img_nhwc = prepare_image(img_feat)

    z_all, lambda_c, attr_proj = am3_forward(img_nhwc, attr_feat, prepared)
    jax.block_until_ready((z_all, lambda_c, attr_proj))

    z_ref, lam_ref, proj_ref = _reference_forward(img_nhwc, attr_feat, params)
    assert z_all.shape == (N_IMG, FEAT_DIM)
    assert lambda_c.shape == (N_WAY, 1)
    assert attr_proj.shape == (N_WAY, FEAT_DIM)
    # bf16 matmul inputs (f32 accumulation) -> relaxed tolerance.
    assert jnp.allclose(z_all, z_ref, atol=1e-2, rtol=1e-2)
    assert jnp.allclose(attr_proj, proj_ref, atol=1e-2, rtol=1e-2)
    assert jnp.allclose(lambda_c, lam_ref)

    print("KERNEL_OK")
</pallas_src>

<mosaic_0001>
module attributes {stable_mosaic.version = 11 : i64} {
  func.func @_am3_kernel(%arg0: memref<2560x27xbf16, #tpu.memory_space<vmem>>, %arg1: memref<27x128xbf16, #tpu.memory_space<vmem>>, %arg2: memref<1x128xf32, #tpu.memory_space<vmem>>, %arg3: memref<2x16xbf16, #tpu.memory_space<vmem>>, %arg4: memref<16x384xbf16, #tpu.memory_space<vmem>>, %arg5: memref<1x384xf32, #tpu.memory_space<vmem>>, %arg6: memref<384x128xbf16, #tpu.memory_space<vmem>>, %arg7: memref<1x128xf32, #tpu.memory_space<vmem>>, %arg8: memref<10x128xf32, #tpu.memory_space<vmem>>, %arg9: memref<2x128xf32, #tpu.memory_space<vmem>>) attributes {dimension_semantics = [], scalar_prefetch = 0 : i64, scratch_operands = 0 : i64, tpu.core_type = #tpu.core_type<tc>} {
    %c0 = arith.constant 0 : index
    %c0_0 = arith.constant 0 : index
    %0 = vector.load %arg0[%c0, %c0_0] : memref<2560x27xbf16, #tpu.memory_space<vmem>>, vector<2560x27xbf16>
    %c0_1 = arith.constant 0 : index
    %c0_2 = arith.constant 0 : index
    %1 = vector.load %arg1[%c0_1, %c0_2] : memref<27x128xbf16, #tpu.memory_space<vmem>>, vector<27x128xbf16>
    %cst = arith.constant dense<0.000000e+00> : vector<2560x128xf32>
    %2 = tpu.matmul %0, %1, %cst {dimension_numbers = #tpu.dot_dimension_numbers<[1], [0], [0], [1], [0, 0, 1, 1], [], []>} : vector<2560x27xbf16>, vector<27x128xbf16>, vector<2560x128xf32> -> vector<2560x128xf32>
    %c0_3 = arith.constant 0 : index
    %c0_4 = arith.constant 0 : index
    %3 = vector.load %arg2[%c0_3, %c0_4] : memref<1x128xf32, #tpu.memory_space<vmem>>, vector<1x128xf32>
    %4 = vector.broadcast %3 : vector<1x128xf32> to vector<2560x128xf32>
    %5 = arith.addf %2, %4 : vector<2560x128xf32>
    %cst_5 = arith.constant 0.000000e+00 : f32
    %6 = vector.broadcast %cst_5 : f32 to vector<2560x128xf32>
    %7 = arith.maximumf %5, %6 : vector<2560x128xf32>
    %8 = vector.shape_cast %7 : vector<2560x128xf32> to vector<10x256x128xf32>
    %cst_6 = arith.constant dense<0.000000e+00> : vector<10x128xf32>
    %9 = vector.multi_reduction <add>, %8, %cst_6 [1] : vector<10x256x128xf32> to vector<10x128xf32>
    %cst_7 = arith.constant 2.560000e+02 : f32
    %10 = vector.broadcast %cst_7 : f32 to vector<10x128xf32>
    %11 = arith.divf %9, %10 : vector<10x128xf32>
    %c0_8 = arith.constant 0 : index
    %c0_9 = arith.constant 0 : index
    %12 = vector.load %arg8[%c0_8, %c0_9] : memref<10x128xf32, #tpu.memory_space<vmem>>, vector<10x128xf32>
    tpu.vector_store %arg8[%c0_8, %c0_9], %11 {strides = array<i32>} : memref<10x128xf32, #tpu.memory_space<vmem>>, vector<10x128xf32>,
    %c0_10 = arith.constant 0 : index
    %c0_11 = arith.constant 0 : index
    %13 = vector.load %arg3[%c0_10, %c0_11] : memref<2x16xbf16, #tpu.memory_space<vmem>>, vector<2x16xbf16>
    %c0_12 = arith.constant 0 : index
    %c0_13 = arith.constant 0 : index
    %14 = vector.load %arg4[%c0_12, %c0_13] : memref<16x384xbf16, #tpu.memory_space<vmem>>, vector<16x384xbf16>
    %cst_14 = arith.constant dense<0.000000e+00> : vector<2x384xf32>
    %15 = tpu.matmul %13, %14, %cst_14 {dimension_numbers = #tpu.dot_dimension_numbers<[1], [0], [0], [1], [0, 0, 1, 1], [], []>} : vector<2x16xbf16>, vector<16x384xbf16>, vector<2x384xf32> -> vector<2x384xf32>
    %c0_15 = arith.constant 0 : index
    %c0_16 = arith.constant 0 : index
    %16 = vector.load %arg5[%c0_15, %c0_16] : memref<1x384xf32, #tpu.memory_space<vmem>>, vector<1x384xf32>
    %17 = vector.broadcast %16 : vector<1x384xf32> to vector<2x384xf32>
    %18 = arith.addf %15, %17 : vector<2x384xf32>
    %cst_17 = arith.constant 0.000000e+00 : f32
    %19 = vector.broadcast %cst_17 : f32 to vector<2x384xf32>
    %20 = arith.maximumf %18, %19 : vector<2x384xf32>
    %21 = arith.truncf %20 : vector<2x384xf32> to vector<2x384xbf16>
    %c0_18 = arith.constant 0 : index
    %c0_19 = arith.constant 0 : index
    %22 = vector.load %arg6[%c0_18, %c0_19] : memref<384x128xbf16, #tpu.memory_space<vmem>>, vector<384x128xbf16>
    %cst_20 = arith.constant dense<0.000000e+00> : vector<2x128xf32>
    %23 = tpu.matmul %21, %22, %cst_20 {dimension_numbers = #tpu.dot_dimension_numbers<[1], [0], [0], [1], [0, 0, 1, 1], [], []>} : vector<2x384xbf16>, vector<384x128xbf16>, vector<2x128xf32> -> vector<2x128xf32>
    %c0_21 = arith.constant 0 : index
    %c0_22 = arith.constant 0 : index
    %24 = vector.load %arg7[%c0_21, %c0_22] : memref<1x128xf32, #tpu.memory_space<vmem>>, vector<1x128xf32>
    %25 = vector.broadcast %24 : vector<1x128xf32> to vector<2x128xf32>
    %26 = arith.addf %23, %25 : vector<2x128xf32>
    %c0_23 = arith.constant 0 : index
    %c0_24 = arith.constant 0 : index
    %27 = vector.load %arg9[%c0_23, %c0_24] : memref<2x128xf32, #tpu.memory_space<vmem>>, vector<2x128xf32>
    tpu.vector_store %arg9[%c0_23, %c0_24], %26 {strides = array<i32>} : memref<2x128xf32, #tpu.memory_space<vmem>>, vector<2x128xf32>,
    return
  }
}

</mosaic_0001>

<bundles_post_ra>
// kernel: am3_forward.1
= control target key start
LH: loop header
LB: loop body
LE: loop exit
PB: predicated region body
PF: predicated region fallthrough
CT: control target
= control target key end

     0   :  { %15 = vsyncpa [#allocation3], 0  ;;  %vm1657_vm0 = vcmask 1044480   ;;  %vm1658_vm1 = vcmask 1045504   ;;  %v5296_v2 = vmov 65535   ;;  %vm1176_vm2 = vcmask 220160   ;;  %s6544_s0 = inlined_call_operand.vmem [shape: bf16[2560,27], index: 0, kind: input, shape index: {}]   ;;  %s6545_s1 = inlined_call_operand.vmem [shape: bf16[27,128], index: 1, kind: input, shape index: {}]   ;;  %s6546_s2 = inlined_call_operand.vmem [shape: f32[1,128], index: 2, kind: input, shape index: {}]   ;;  %s6547_s3 = inlined_call_operand.vmem [shape: bf16[2,16], index: 3, kind: input, shape index: {}]   ;;  %s6548_s4 = inlined_call_operand.vmem [shape: bf16[16,384], index: 4, kind: input, shape index: {}]   ;;  %s6549_s5 = inlined_call_operand.vmem [shape: f32[1,384], index: 5, kind: input, shape index: {}]   ;;  %s6550_s6 = inlined_call_operand.vmem [shape: bf16[384,128], index: 6, kind: input, shape index: {}]   ;;  %s6551_s7 = inlined_call_operand.vmem [shape: f32[1,128], index: 7, kind: input, shape index: {}]   ;;  %s6552_s8 = inlined_call_operand.hbm [shape: f32[10,128], index: 8, kind: output, shape index: {0}]   ;;  %s6553_s9 = inlined_call_operand.hbm [shape: f32[2,128], index: 9, kind: output, shape index: {1}]  }
   0x1   :  { %v5056_v0 = vld [vmem:[%s6545_s1] sm:$0xff]   ;;  %v5057_v1 = vld [vmem:[%s6545_s1 + $0x8] sm:$0x3f]   ;;  %v1659_v3 = vsel %vm1657_vm0, 4294967295, %v5296_v2  ;;  %v5059_v5 = vld [vmem:[%s6544_s0 + $0x2d0] sm:$0xff]  }
   0x2   :  { %4694 = vmatprep.subr.bf16.mxu0 %v5056_v0  ;;  %5044 = vmatprep.subr.bf16.mxu1 %v5056_v0  ;;  %v5058_v4 = vld [vmem:[%s6544_s0] sm:$0xff]   ;;  %v1660_v6 = vsel %vm1658_vm1, %v1659_v3, 0  ;;  %v5060_v8 = vld [vmem:[%s6544_s0 + $0x8] sm:$0xff]   ;;  %v5061_v9 = vld [vmem:[%s6544_s0 + $0x2d8] sm:$0xff]  }
   0x3   :  { %4695 = vmatpush3.bf16.msra.mxu0 %v5056_v0  ;;  %5046 = vmatpush3.bf16.msra.mxu1 %v5056_v0  ;;  %v1662_v7 = vand.u32 %v5057_v1, %v1660_v6  ;;  %v5062_v10 = vld [vmem:[%s6548_s4] ss:$12 sps:$4 sm:$0xff]   ;;  %v5064_v11 = vld [vmem:[%s6548_s4 + $0x4] ss:$12 sps:$4 sm:$0xff]   ;;  %v5067_v14 = vld [vmem:[%s6544_s0 + $0x18] sm:$0xff]  }
   0x4   :  { %4698 = vmatprep.mubr.msk.bf16.mxu0 %vm1176_vm2, %v5058_v4  ;;  %4878 = vmatprep.mubr.msk.bf16.mxu1 %vm1176_vm2, %v5059_v5  ;;  %v5065_v12 = vld [vmem:[%s6544_s0 + $0x10] sm:$0xff]   ;;  %v5066_v13 = vld [vmem:[%s6544_s0 + $0x2e0] sm:$0xff]   ;;  %v5068_v15 = vld [vmem:[%s6544_s0 + $0x2e8] sm:$0xff]  }
   0x5   :  { %4696 = vmatprep.subr.bf16.mxu0 %v1662_v7  ;;  %5045 = vmatprep.subr.bf16.mxu1 %v1662_v7  ;;  %v5069_v16 = vld [vmem:[%s6544_s0 + $0x20] sm:$0xff]   ;;  %v5070_v17 = vld [vmem:[%s6544_s0 + $0x2f0] sm:$0xff]   ;;  %v5071_v18 = vld [vmem:[%s6544_s0 + $0x28] sm:$0xff]  }
   0x6   :  { %v5072_v19 = vld [vmem:[%s6544_s0 + $0x2f8] sm:$0xff]   ;;  %v5073_v20 = vld [vmem:[%s6544_s0 + $0x30] sm:$0xff]   ;;  %v5074_v21 = vld [vmem:[%s6544_s0 + $0x300] sm:$0xff]  }
   0x7   :  { %4697 = vmatpush3.bf16.msra.mxu0 %v1662_v7  ;;  %5047 = vmatpush3.bf16.msra.mxu1 %v1662_v7  ;;  %v5075_v22 = vld [vmem:[%s6544_s0 + $0x38] sm:$0xff]   ;;  %v5076_v23 = vld [vmem:[%s6544_s0 + $0x308] sm:$0xff]   ;;  %v5077_v24 = vld [vmem:[%s6544_s0 + $0x40] sm:$0xff]  }
   0x8   :  { %3749 = vmatprep.subr.bf16.mxu1 %v5064_v11  ;;  %v5078_v25 = vld [vmem:[%s6544_s0 + $0x310] sm:$0xff]   ;;  %v5079_v26 = vld [vmem:[%s6544_s0 + $0x48] sm:$0xff]   ;;  %v5080_v27 = vld [vmem:[%s6544_s0 + $0x318] sm:$0xff]  }
   0x9   :  { %v5081_v28 = vld [vmem:[%s6544_s0 + $0x50] sm:$0xff]   ;;  %v5082_v29 = vld [vmem:[%s6544_s0 + $0x320] sm:$0xff]   ;;  %v5083_v30 = vld [vmem:[%s6544_s0 + $0x58] sm:$0xff]  }
   0xa   :  { %4699 = vmatmul.mubr.msk.bf16.vlgmr.msra.gmra.mrb[0].mxu0 %vm1176_vm2, %v5060_v8  ;;  %4879 = vmatmul.mubr.msk.bf16.vlgmr.msra.gmra.mrb[0].mxu1 %vm1176_vm2, %v5061_v9  ;;  %v5084_v31 = vld [vmem:[%s6544_s0 + $0x328] sm:$0xff]   ;;  %v5085_v32 = vld [vmem:[%s6544_s0 + $0x60] sm:$0xff]   ;;  %v5086_v33 = vld [vmem:[%s6544_s0 + $0x330] sm:$0xff]  }
   0xb   :  { %3750 = vmatpush1.bf16.msra.mxu1 %v5062_v10  ;;  %4702 = vmatprep.mubr.msk.bf16.mxu0 %vm1176_vm2, %v5065_v12  ;;  %v5087_v34 = vld [vmem:[%s6544_s0 + $0x68] sm:$0xff]   ;;  %v5088_v35 = vld [vmem:[%s6544_s0 + $0x338] sm:$0xff]   ;;  %v5089_v36 = vld [vmem:[%s6544_s0 + $0x70] sm:$0xff]  }
   0xc   :  { %4882 = vmatprep.mubr.msk.bf16.mxu1 %vm1176_vm2, %v5066_v13  ;;  %v5090_v37 = vld [vmem:[%s6544_s0 + $0x340] sm:$0xff]   ;;  %v5091_v38 = vld [vmem:[%s6544_s0 + $0x78] sm:$0xff]   ;;  %v5092_v39 = vld [vmem:[%s6544_s0 + $0x348] sm:$0xff]  }
   0xd   :  { %v5093_v40 = vld [vmem:[%s6544_s0 + $0x80] sm:$0xff]   ;;  %v5094_v41 = vld [vmem:[%s6544_s0 + $0x350] sm:$0xff]   ;;  %v5095_v42 = vld [vmem:[%s6544_s0 + $0x88] sm:$0xff]  }
   0xe   :  { %v5096_v43 = vld [vmem:[%s6544_s0 + $0x358] sm:$0xff]   ;;  %v5097_v44 = vld [vmem:[%s6544_s0 + $0x90] sm:$0xff]   ;;  %v5098_v45 = vld [vmem:[%s6544_s0 + $0x360] sm:$0xff]  }
   0xf   :  { %v5099_v46 = vld [vmem:[%s6544_s0 + $0x98] sm:$0xff]   ;;  %v5100_v47 = vld [vmem:[%s6544_s0 + $0x368] sm:$0xff]   ;;  %v5101_v48 = vld [vmem:[%s6544_s0 + $0xa0] sm:$0xff]  }
  0x10   :  { %v5102_v49 = vld [vmem:[%s6544_s0 + $0x370] sm:$0xff]   ;;  %v5103_v50 = vld [vmem:[%s6544_s0 + $0xa8] sm:$0xff]   ;;  %v5104_v51 = vld [vmem:[%s6544_s0 + $0x378] sm:$0xff]  }
  0x11   :  { %v5105_v52 = vld [vmem:[%s6544_s0 + $0xb0] sm:$0xff]   ;;  %v5106_v53 = vld [vmem:[%s6544_s0 + $0x380] sm:$0xff]   ;;  %v5107_v54 = vld [vmem:[%s6544_s0 + $0xb8] sm:$0xff]  }
  0x12   :  { %4703 = vmatmul.mubr.msk.bf16.gmra.mrb[4].mxu0 %vm1176_vm2, %v5067_v14  ;;  %4883 = vmatmul.mubr.msk.bf16.gmra.mrb[4].mxu1 %vm1176_vm2, %v5068_v15  ;;  %v5108_v55 = vld [vmem:[%s6544_s0 + $0x388] sm:$0xff]   ;;  %v5109_v56 = vld [vmem:[%s6544_s0 + $0xc0] sm:$0xff]   ;;  %v5110_v57 = vld [vmem:[%s6544_s0 + $0x390] sm:$0xff]  }
  0x13   :  { %4706 = vmatprep.mubr.msk.bf16.mxu0 %vm1176_vm2, %v5069_v16  ;;  %4886 = vmatprep.mubr.msk.bf16.mxu1 %vm1176_vm2, %v5070_v17  ;;  %v5111_v58 = vld [vmem:[%s6544_s0 + $0xc8] sm:$0xff]   ;;  %v5112_v59 = vld [vmem:[%s6544_s0 + $0x398] sm:$0xff]   ;;  %v5113_v60 = vld [vmem:[%s6544_s0 + $0xd0] sm:$0xff]  }
  0x14   :  { %v5114_v61 = vld [vmem:[%s6544_s0 + $0x3a0] sm:$0xff]   ;;  %v5115_v62 = vld [vmem:[%s6544_s0 + $0xd8] sm:$0xff]   ;;  %v5116_v63 = vld [vmem:[%s6544_s0 + $0x3a8] sm:$0xff]  }
  0x15   :  { %v5117_v0 = vld [vmem:[%s6544_s0 + $0xe0] sm:$0xff]   ;;  %v5118_v1 = vld [vmem:[%s6544_s0 + $0x3b0] sm:$0xff]   ;;  %v5119_v2 = vld [vmem:[%s6544_s0 + $0xe8] sm:$0xff]  }
  0x16   :  { %v5120_v3 = vld [vmem:[%s6544_s0 + $0x3b8] sm:$0xff]   ;;  %v5121_v4 = vld [vmem:[%s6544_s0 + $0xf0] sm:$0xff]   ;;  %v5122_v5 = vld [vmem:[%s6544_s0 + $0x3c0] sm:$0xff]  }
  0x17   :  { %v5123_v6 = vld [vmem:[%s6544_s0 + $0xf8] sm:$0xff]   ;;  %v5124_v7 = vld [vmem:[%s6544_s0 + $0x3c8] sm:$0xff]   ;;  %v5125_v8 = vld [vmem:[%s6544_s0 + $0x100] sm:$0xff]  }
  0x18   :  { %v5126_v9 = vld [vmem:[%s6544_s0 + $0x3d0] sm:$0xff]   ;;  %v5127_v10 = vld [vmem:[%s6544_s0 + $0x108] sm:$0xff]   ;;  %v5128_v11 = vld [vmem:[%s6544_s0 + $0x3d8] sm:$0xff]  }
  0x19   :  { %v5129_v12 = vld [vmem:[%s6544_s0 + $0x110] sm:$0xff]   ;;  %v5130_v13 = vld [vmem:[%s6544_s0 + $0x3e0] sm:$0xff]   ;;  %v5131_v14 = vld [vmem:[%s6544_s0 + $0x118] sm:$0xff]  }
  0x1a   :  { %4707 = vmatmul.mubr.msk.bf16.gmra.mrb[8].mxu0 %vm1176_vm2, %v5071_v18  ;;  %4887 = vmatmul.mubr.msk.bf16.gmra.mrb[8].mxu1 %vm1176_vm2, %v5072_v19  ;;  %v5132_v15 = vld [vmem:[%s6544_s0 + $0x3e8] sm:$0xff]   ;;  %v5133_v16 = vld [vmem:[%s6544_s0 + $0x120] sm:$0xff]   ;;  %v5134_v17 = vld [vmem:[%s6544_s0 + $0x3f0] sm:$0xff]  }
  0x1b   :  { %4710 = vmatprep.mubr.msk.bf16.mxu0 %vm1176_vm2, %v5073_v20  ;;  %4890 = vmatprep.mubr.msk.bf16.mxu1 %vm1176_vm2, %v5074_v21  ;;  %v5135_v18 = vld [vmem:[%s6544_s0 + $0x128] sm:$0xff]   ;;  %v5136_v19 = vld [vmem:[%s6544_s0 + $0x3f8] sm:$0xff]   ;;  %v5137_v20 = vld [vmem:[%s6544_s0 + $0x130] sm:$0xff]  }
  0x1c   :  { %v5138_v21 = vld [vmem:[%s6544_s0 + $0x400] sm:$0xff]  }
  0x22   :  { %4711 = vmatmul.mubr.msk.bf16.gmra.mrb[12].mxu0 %vm1176_vm2, %v5075_v22  ;;  %4891 = vmatmul.mubr.msk.bf16.gmra.mrb[12].mxu1 %vm1176_vm2, %v5076_v23  ;;  %v5139_v22 = vld [vmem:[%s6544_s0 + $0x138] sm:$0xff]   ;;  %v5140_v23 = vld [vmem:[%s6544_s0 + $0x408] sm:$0xff]  }
  0x23   :  { %4714 = vmatprep.mubr.msk.bf16.mxu0 %vm1176_vm2, %v5077_v24  ;;  %4894 = vmatprep.mubr.msk.bf16.mxu1 %vm1176_vm2, %v5078_v25  ;;  %v5141_v24 = vld [vmem:[%s6544_s0 + $0x140] sm:$0xff]   ;;  %v5142_v25 = vld [vmem:[%s6544_s0 + $0x410] sm:$0xff]  }
  0x2a   :  { %4715 = vmatmul.mubr.msk.bf16.gmra.mrb[16].mxu0 %vm1176_vm2, %v5079_v26  ;;  %4895 = vmatmul.mubr.msk.bf16.gmra.mrb[16].mxu1 %vm1176_vm2, %v5080_v27  ;;  %v5143_v26 = vld [vmem:[%s6544_s0 + $0x148] sm:$0xff]   ;;  %v5144_v27 = vld [vmem:[%s6544_s0 + $0x418] sm:$0xff]  }
  0x2b   :  { %4718 = vmatprep.mubr.msk.bf16.mxu0 %vm1176_vm2, %v5081_v28  ;;  %4898 = vmatprep.mubr.msk.bf16.mxu1 %vm1176_vm2, %v5082_v29  ;;  %v5145_v28 = vld [vmem:[%s6544_s0 + $0x150] sm:$0xff]   ;;  %v5146_v29 = vld [vmem:[%s6544_s0 + $0x420] sm:$0xff]  }
  0x32   :  { %4719 = vmatmul.mubr.msk.bf16.gmra.mrb[20].mxu0 %vm1176_vm2, %v5083_v30  ;;  %4899 = vmatmul.mubr.msk.bf16.gmra.mrb[20].mxu1 %vm1176_vm2, %v5084_v31  ;;  %v5147_v30 = vld [vmem:[%s6544_s0 + $0x158] sm:$0xff]   ;;  %v5148_v31 = vld [vmem:[%s6544_s0 + $0x428] sm:$0xff]  }
  0x33   :  { %4722 = vmatprep.mubr.msk.bf16.mxu0 %vm1176_vm2, %v5085_v32  ;;  %4902 = vmatprep.mubr.msk.bf16.mxu1 %vm1176_vm2, %v5086_v33  ;;  %v5149_v32 = vld [vmem:[%s6544_s0 + $0x160] sm:$0xff]   ;;  %v5150_v33 = vld [vmem:[%s6544_s0 + $0x430] sm:$0xff]  }
  0x3a   :  { %4723 = vmatmul.mubr.msk.bf16.gmra.mrb[24].mxu0 %vm1176_vm2, %v5087_v34  ;;  %4903 = vmatmul.mubr.msk.bf16.gmra.mrb[24].mxu1 %vm1176_vm2, %v5088_v35 }
  0x3b   :  { %4726 = vmatprep.mubr.msk.bf16.mxu0 %vm1176_vm2, %v5089_v36  ;;  %4906 = vmatprep.mubr.msk.bf16.mxu1 %vm1176_vm2, %v5090_v37 }
  0x42   :  { %4727 = vmatmul.mubr.msk.bf16.gmra.mrb[28].mxu0 %vm1176_vm2, %v5091_v38  ;;  %4907 = vmatmul.mubr.msk.bf16.gmra.mrb[28].mxu1 %vm1176_vm2, %v5092_v39 }
  0x43   :  { %4730 = vmatprep.mubr.msk.bf16.mxu0 %vm1176_vm2, %v5093_v40  ;;  %4910 = vmatprep.mubr.msk.bf16.mxu1 %vm1176_vm2, %v5094_v41 }
  0x4a   :  { %4731 = vmatmul.mubr.msk.bf16.gmra.mrb[32].mxu0 %vm1176_vm2, %v5095_v42  ;;  %4911 = vmatmul.mubr.msk.bf16.gmra.mrb[32].mxu1 %vm1176_vm2, %v5096_v43 }
  0x4b   :  { %4734 = vmatprep.mubr.msk.bf16.mxu0 %vm1176_vm2, %v5097_v44  ;;  %4914 = vmatprep.mubr.msk.bf16.mxu1 %vm1176_vm2, %v5098_v45 }
  0x52   :  { %4735 = vmatmul.mubr.msk.bf16.gmra.mrb[36].mxu0 %vm1176_vm2, %v5099_v46  ;;  %4915 = vmatmul.mubr.msk.bf16.gmra.mrb[36].mxu1 %vm1176_vm2, %v5100_v47 }
  0x53   :  { %4738 = vmatprep.mubr.msk.bf16.mxu0 %vm1176_vm2, %v5101_v48  ;;  %4918 = vmatprep.mubr.msk.bf16.mxu1 %vm1176_vm2, %v5102_v49 }
  0x5a   :  { %4739 = vmatmul.mubr.msk.bf16.gmra.mrb[40].mxu0 %vm1176_vm2, %v5103_v50  ;;  %4919 = vmatmul.mubr.msk.bf16.gmra.mrb[40].mxu1 %vm1176_vm2, %v5104_v51 }
  0x5b   :  { %4742 = vmatprep.mubr.msk.bf16.mxu0 %vm1176_vm2, %v5105_v52  ;;  %4922 = vmatprep.mubr.msk.bf16.mxu1 %vm1176_vm2, %v5106_v53 }
  0x62   :  { %4743 = vmatmul.mubr.msk.bf16.gmra.mrb[44].mxu0 %vm1176_vm2, %v5107_v54  ;;  %4923 = vmatmul.mubr.msk.bf16.gmra.mrb[44].mxu1 %vm1176_vm2, %v5108_v55 }
  0x63   :  { %4746 = vmatprep.mubr.msk.bf16.mxu0 %vm1176_vm2, %v5109_v56  ;;  %4926 = vmatprep.mubr.msk.bf16.mxu1 %vm1176_vm2, %v5110_v57 }
  0x6a   :  { %4747 = vmatmul.mubr.msk.bf16.gmra.mrb[48].mxu0 %vm1176_vm2, %v5111_v58  ;;  %4927 = vmatmul.mubr.msk.bf16.gmra.mrb[48].mxu1 %vm1176_vm2, %v5112_v59 }
  0x6b   :  { %4750 = vmatprep.mubr.msk.bf16.mxu0 %vm1176_vm2, %v5113_v60  ;;  %4930 = vmatprep.mubr.msk.bf16.mxu1 %vm1176_vm2, %v5114_v61 }
  0x72   :  { %4751 = vmatmul.mubr.msk.bf16.gmra.mrb[52].mxu0 %vm1176_vm2, %v5115_v62  ;;  %4931 = vmatmul.mubr.msk.bf16.gmra.mrb[52].mxu1 %vm1176_vm2, %v5116_v63 }
  0x73   :  { %4754 = vmatprep.mubr.msk.bf16.mxu0 %vm1176_vm2, %v5117_v0  ;;  %4934 = vmatprep.mubr.msk.bf16.mxu1 %vm1176_vm2, %v5118_v1 }
  0x7a   :  { %4755 = vmatmul.mubr.msk.bf16.gmra.mrb[56].mxu0 %vm1176_vm2, %v5119_v2  ;;  %4935 = vmatmul.mubr.msk.bf16.gmra.mrb[56].mxu1 %vm1176_vm2, %v5120_v3 }
  0x7b   :  { %4758 = vmatprep.mubr.msk.bf16.mxu0 %vm1176_vm2, %v5121_v4  ;;  %4938 = vmatprep.mubr.msk.bf16.mxu1 %vm1176_vm2, %v5122_v5 }
  0x82   :  { %4759 = vmatmul.mubr.msk.bf16.gmra.mrb[60].mxu0 %vm1176_vm2, %v5123_v6  ;;  %4939 = vmatmul.mubr.msk.bf16.gmra.mrb[60].mxu1 %vm1176_vm2, %v5124_v7 }
  0x83   :  { %4762 = vmatprep.mubr.msk.bf16.mxu0 %vm1176_vm2, %v5125_v8  ;;  %4942 = vmatprep.mubr.msk.bf16.mxu1 %vm1176_vm2, %v5126_v9 }
  0x8a   :  { %4763 = vmatmul.mubr.msk.bf16.gmra.mrb[64].mxu0 %vm1176_vm2, %v5127_v10  ;;  %4943 = vmatmul.mubr.msk.bf16.gmra.mrb[64].mxu1 %vm1176_vm2, %v5128_v11 }
  0x8b   :  { %4766 = vmatprep.mubr.msk.bf16.mxu0 %vm1176_vm2, %v5129_v12  ;;  %4946 = vmatprep.mubr.msk.bf16.mxu1 %vm1176_vm2, %v5130_v13 }
  0x92   :  { %4767 = vmatmul.mubr.msk.bf16.gmra.mrb[68].mxu0 %vm1176_vm2, %v5131_v14  ;;  %4947 = vmatmul.mubr.msk.bf16.gmra.mrb[68].mxu1 %vm1176_vm2, %v5132_v15 }
  0x93   :  { %4770 = vmatprep.mubr.msk.bf16.mxu0 %vm1176_vm2, %v5133_v16  ;;  %4950 = vmatprep.mubr.msk.bf16.mxu1 %vm1176_vm2, %v5134_v17 }
  0x9a   :  { %4771 = vmatmul.mubr.msk.bf16.gmra.mrb[72].mxu0 %vm1176_vm2, %v5135_v18  ;;  %4951 = vmatmul.mubr.msk.bf16.gmra.mrb[72].mxu1 %vm1176_vm2, %v5136_v19 }
  0x9b   :  { %4774 = vmatprep.mubr.msk.bf16.mxu0 %vm1176_vm2, %v5137_v20  ;;  %4954 = vmatprep.mubr.msk.bf16.mxu1 %vm1176_vm2, %v5138_v21 }
  0xa2   :  { %4775 = vmatmul.mubr.msk.bf16.gmra.mrb[76].mxu0 %vm1176_vm2, %v5139_v22  ;;  %4955 = vmatmul.mubr.msk.bf16.gmra.mrb[76].mxu1 %vm1176_vm2, %v5140_v23 }
  0xa3   :  { %4778 = vmatprep.mubr.msk.bf16.mxu0 %vm1176_vm2, %v5141_v24  ;;  %4958 = vmatprep.mubr.msk.bf16.mxu1 %vm1176_vm2, %v5142_v25 }
  0xaa   :  { %4779 = vmatmul.mubr.msk.bf16.gmra.mrb[80].mxu0 %vm1176_vm2, %v5143_v26  ;;  %4959 = vmatmul.mubr.msk.bf16.gmra.mrb[80].mxu1 %vm1176_vm2, %v5144_v27 }
  0xab   :  { %4782 = vmatprep.mubr.msk.bf16.mxu0 %vm1176_vm2, %v5145_v28  ;;  %4962 = vmatprep.mubr.msk.bf16.mxu1 %vm1176_vm2, %v5146_v29 }
  0xac   :  { %16 = vsyncpa [#allocation5], 0  ;;  %v5151_v34 = vld [vmem:[%s6544_s0 + $0x168] sm:$0xff]   ;;  %v5152_v35 = vld [vmem:[%s6544_s0 + $0x438] sm:$0xff]   ;;  %v5297_v38 = vmov 0.0   ;;  %vm3745_vm3 = vcmask 130048  }
  0xad   :  { %v5153_v36 = vld [vmem:[%s6544_s0 + $0x170] sm:$0xff]   ;;  %v5154_v37 = vld [vmem:[%s6544_s0 + $0x440] sm:$0xff]   ;;  %5018 = vmatprep.subr.bf16.mxu1 %v5297_v38  ;;  %v5155_v39 = vld [vmem:[%s6544_s0 + $0x178] sm:$0xff]   ;;  %vm5299_vm4 = vmmov 0   ;;  %vm3688_vm5 = vcmask 1041409   ;;  %vm3690_vm6 = vcmask 1042434  }
  0xae   :  { %v5156_v40 = vld [vmem:[%s6544_s0 + $0x448] sm:$0xff]   ;;  %v5157_v41 = vld [vmem:[%s6544_s0 + $0x180] sm:$0xff]   ;;  %v5158_v42 = vld [vmem:[%s6544_s0 + $0x450] sm:$0xff]   ;;  %vm3692_vm7 = vcmask 1043459   ;;  %vm3694_vm8 = vcmask 1044484   ;;  %vm3696_vm9 = vcmask 1045509  }
  0xaf   :  { %v5159_v43 = vld [vmem:[%s6544_s0 + $0x188] sm:$0xff]   ;;  %v5160_v44 = vld [vmem:[%s6544_s0 + $0x458] sm:$0xff]   ;;  %v5161_v45 = vld [vmem:[%s6544_s0 + $0x190] sm:$0xff]   ;;  %vm3698_vm10 = vcmask 1046534   ;;  %vm3700_vm11 = vcmask 1047559  }
  0xb0   :  { %v5162_v46 = vld [vmem:[%s6544_s0 + $0x460] sm:$0xff]   ;;  %v5163_v47 = vld [vmem:[%s6544_s0 + $0x198] sm:$0xff]   ;;  %v5164_v48 = vld [vmem:[%s6544_s0 + $0x468] sm:$0xff]  }
  0xb1   :  { %v5165_v49 = vld [vmem:[%s6544_s0 + $0x1a0] sm:$0xff]   ;;  %v5166_v50 = vld [vmem:[%s6544_s0 + $0x470] sm:$0xff]   ;;  %v5167_v51 = vld [vmem:[%s6544_s0 + $0x1a8] sm:$0xff]  }
  0xb2   :  { %4783 = vmatmul.mubr.msk.bf16.gmra.mrb[84].mxu0 %vm1176_vm2, %v5147_v30  ;;  %4963 = vmatmul.mubr.msk.bf16.gmra.mrb[84].mxu1 %vm1176_vm2, %v5148_v31  ;;  %v5168_v52 = vld [vmem:[%s6544_s0 + $0x478] sm:$0xff]   ;;  %v5169_v53 = vld [vmem:[%s6544_s0 + $0x1b0] sm:$0xff]   ;;  %v5170_v54 = vld [vmem:[%s6544_s0 + $0x480] sm:$0xff]  }
  0xb3   :  { %4786 = vmatprep.mubr.msk.bf16.mxu0 %vm1176_vm2, %v5149_v32  ;;  %4966 = vmatprep.mubr.msk.bf16.mxu1 %vm1176_vm2, %v5150_v33  ;;  %v5812_v57 = vld [vmem:[%s6546_s2] ss:$0 sm:$0xff]  ;;  %v5171_v59 = vld [vmem:[%s6544_s0 + $0x1b8] sm:$0xff]   ;;  %v5172_v60 = vld [vmem:[%s6544_s0 + $0x488] sm:$0xff]  }
  0xb4   :  { %v5173_v63 = vld [vmem:[%s6544_s0 + $0x1c0] sm:$0xff]   ;;  %v5174_v0 = vld [vmem:[%s6544_s0 + $0x490] sm:$0xff]   ;;  %v5175_v16 = vld [vmem:[%s6544_s0 + $0x1c8] sm:$0xff]  }
  0xb5   :  { %v5176_v17 = vld [vmem:[%s6544_s0 + $0x498] sm:$0xff]   ;;  %v5177_v20 = vld [vmem:[%s6544_s0 + $0x1d0] sm:$0xff]   ;;  %v5178_v21 = vld [vmem:[%s6544_s0 + $0x4a0] sm:$0xff]  }
  0xba   :  { %4787 = vmatmul.mubr.msk.bf16.gmra.mrb[88].mxu0 %vm1176_vm2, %v5151_v34  ;;  %4967 = vmatmul.mubr.msk.bf16.gmra.mrb[88].mxu1 %vm1176_vm2, %v5152_v35 }
  0xbb   :  { %4790 = vmatprep.mubr.msk.bf16.mxu0 %vm1176_vm2, %v5153_v36  ;;  %4970 = vmatprep.mubr.msk.bf16.mxu1 %vm1176_vm2, %v5154_v37 }
  0xc2   :  { %4791 = vmatmul.mubr.msk.bf16.gmra.mrb[92].mxu0 %vm1176_vm2, %v5155_v39  ;;  %4971 = vmatmul.mubr.msk.bf16.gmra.mrb[92].mxu1 %vm1176_vm2, %v5156_v40  ;;  %v5179_v39 = vld [vmem:[%s6544_s0 + $0x1d8] sm:$0xff]   ;;  %v5180_v40 = vld [vmem:[%s6544_s0 + $0x4a8] sm:$0xff]  }
  0xc3   :  { %4794 = vmatprep.mubr.msk.bf16.mxu0 %vm1176_vm2, %v5157_v41  ;;  %4974 = vmatprep.mubr.msk.bf16.mxu1 %vm1176_vm2, %v5158_v42 }
  0xca   :  { %4795 = vmatmul.mubr.msk.bf16.gmra.mrb[96].mxu0 %vm1176_vm2, %v5159_v43  ;;  %4975 = vmatmul.mubr.msk.bf16.gmra.mrb[96].mxu1 %vm1176_vm2, %v5160_v44 }
  0xcb   :  { %4798 = vmatprep.mubr.msk.bf16.mxu0 %vm1176_vm2, %v5161_v45  ;;  %4978 = vmatprep.mubr.msk.bf16.mxu1 %vm1176_vm2, %v5162_v46  ;;  %v5181_v45 = vld [vmem:[%s6544_s0 + $0x1e0] sm:$0xff]   ;;  %v5182_v46 = vld [vmem:[%s6544_s0 + $0x4b0] sm:$0xff]  }
  0xd2   :  { %4799 = vmatmul.mubr.msk.bf16.gmra.mrb[100].mxu0 %vm1176_vm2, %v5163_v47  ;;  %4979 = vmatmul.mubr.msk.bf16.gmra.mrb[100].mxu1 %vm1176_vm2, %v5164_v48 }
  0xd3   :  { %4802 = vmatprep.mubr.msk.bf16.mxu0 %vm1176_vm2, %v5165_v49  ;;  %4982 = vmatprep.mubr.msk.bf16.mxu1 %vm1176_vm2, %v5166_v50 }
  0xda   :  { %4803 = vmatmul.mubr.msk.bf16.gmra.mrb[104].mxu0 %vm1176_vm2, %v5167_v51  ;;  %4983 = vmatmul.mubr.msk.bf16.gmra.mrb[104].mxu1 %vm1176_vm2, %v5168_v52 }
  0xdb   :  { %4806 = vmatprep.mubr.msk.bf16.mxu0 %vm1176_vm2, %v5169_v53  ;;  %4986 = vmatprep.mubr.msk.bf16.mxu1 %vm1176_vm2, %v5170_v54 }
  0xdd   :  { %v5807_v55 = vpop.f32.mrb[0].mxu1  ;;  %v4700_v56 = vpop.f32.mrb[0].mxu0 }
  0xde   :  { %v5814_v58 = vpop.f32.mrb[1].mxu1  ;;  %v1698_v61 = vpop.f32.mrb[1].mxu0  ;;  %v1707_v1 = vadd.f32 %v4700_v56, %v5812_v57 }
  0xdf   :  { %v5822_v62 = vpop.f32.mrb[2].mxu1  ;;  %v1699_v2 = vadd.f32 %v5812_v57, %v1698_v61  ;;  %v4701_v3 = vpop.f32.mrb[2].mxu0 }
  0xe0   :  { %v5832_v4 = vpop.f32.mrb[3].mxu1  ;;  %v1701_v5 = vpop.f32.mrb[3].mxu0  ;;  %v1710_v7 = vadd.f32 %v4701_v3, %v5812_v57  ;;  %v2979_v9 = vmax.f32 %v1707_v1, 0.0  ;;  %v5183_v3 = vld [vmem:[%s6544_s0 + $0x1e8] sm:$0xff]  }
  0xe1   :  { %v2977_v6 = vmax.f32 %v1699_v2, 0.0  ;;  %v1702_v8 = vadd.f32 %v5812_v57, %v1701_v5  ;;  %v5184_v5 = vld [vmem:[%s6544_s0 + $0x4b8] sm:$0xff]  }
  0xe2   :  { %4807 = vmatmul.mubr.msk.bf16.gmra.mrb[108].mxu0 %vm1176_vm2, %v5171_v59  ;;  %4987 = vmatmul.mubr.msk.bf16.gmra.mrb[108].mxu1 %vm1176_vm2, %v5172_v60  ;;  %v2980_v12 = vmax.f32 %v1710_v7, 0.0 }
  0xe3   :  { %4810 = vmatprep.mubr.msk.bf16.mxu0 %vm1176_vm2, %v5173_v63  ;;  %4990 = vmatprep.mubr.msk.bf16.mxu1 %vm1176_vm2, %v5174_v0  ;;  %v2978_v10 = vmax.f32 %v1702_v8, 0.0 }
  0xe5   :  { %v5840_v11 = vpop.f32.mrb[4].mxu1  ;;  %v3297_v13 = vadd.f32 %v2978_v10, %v2977_v6  ;;  %v4704_v14 = vpop.f32.mrb[4].mxu0 }
  0xe6   :  { %v5842_v15 = vpop.f32.mrb[5].mxu1  ;;  %v1714_v18 = vpop.f32.mrb[5].mxu0  ;;  %v1723_v26 = vadd.f32 %v4704_v14, %v5812_v57 }
  0xe7   :  { %v5850_v19 = vpop.f32.mrb[6].mxu1  ;;  %v3298_v22 = vadd.f32 %v3297_v13, %v2979_v9  ;;  %v1715_v23 = vadd.f32 %v5812_v57, %v1714_v18  ;;  %v4705_v24 = vpop.f32.mrb[6].mxu0  ;;  %v5186_v13 = vld [vmem:[%s6544_s0 + $0x4c0] sm:$0xff]  }
  0xe8   :  { %v5859_v25 = vpop.f32.mrb[7].mxu1  ;;  %v1717_v27 = vpop.f32.mrb[7].mxu0  ;;  %v1726_v30 = vadd.f32 %v4705_v24, %v5812_v57  ;;  %v2983_v33 = vmax.f32 %v1723_v26, 0.0 }
  0xe9   :  { %v2981_v28 = vmax.f32 %v1715_v23, 0.0  ;;  %v3299_v29 = vadd.f32 %v3298_v22, %v2980_v12  ;;  %v1718_v31 = vadd.f32 %v5812_v57, %v1717_v27  ;;  %v5185_v12 = vld [vmem:[%s6544_s0 + $0x1f0] sm:$0xff]  }
  0xea   :  { %4811 = vmatmul.mubr.msk.bf16.gmra.mrb[112].mxu0 %vm1176_vm2, %v5175_v16  ;;  %4991 = vmatmul.mubr.msk.bf16.gmra.mrb[112].mxu1 %vm1176_vm2, %v5176_v17  ;;  %v2984_v41 = vmax.f32 %v1726_v30, 0.0 }
  0xeb   :  { %4814 = vmatprep.mubr.msk.bf16.mxu0 %vm1176_vm2, %v5177_v20  ;;  %4994 = vmatprep.mubr.msk.bf16.mxu1 %vm1176_vm2, %v5178_v21  ;;  %v3300_v32 = vadd.f32 %v3299_v29, %v2981_v28  ;;  %v2982_v34 = vmax.f32 %v1718_v31, 0.0 }
  0xed   :  { %v5868_v35 = vpop.f32.mrb[8].mxu1  ;;  %v4708_v36 = vpop.f32.mrb[8].mxu0  ;;  %v3301_v42 = vadd.f32 %v3300_v32, %v2982_v34 }
  0xee   :  { %v5870_v37 = vpop.f32.mrb[9].mxu1  ;;  %v1730_v43 = vpop.f32.mrb[9].mxu0  ;;  %v1739_v51 = vadd.f32 %v4708_v36, %v5812_v57 }
  0xef   :  { %v5878_v44 = vpop.f32.mrb[10].mxu1  ;;  %v1731_v47 = vadd.f32 %v5812_v57, %v1730_v43  ;;  %v4709_v48 = vpop.f32.mrb[10].mxu0  ;;  %v3302_v50 = vadd.f32 %v3301_v42, %v2983_v33  ;;  %v5187_v43 = vld [vmem:[%s6544_s0 + $0x1f8] sm:$0xff]  }
  0xf0   :  { %v5887_v49 = vpop.f32.mrb[11].mxu1  ;;  %v1733_v52 = vpop.f32.mrb[11].mxu0  ;;  %v1742_v56 = vadd.f32 %v4709_v48, %v5812_v57  ;;  %v2987_v60 = vmax.f32 %v1739_v51, 0.0 }
  0xf1   :  { %v2985_v53 = vmax.f32 %v1731_v47, 0.0  ;;  %v3303_v54 = vadd.f32 %v3302_v50, %v2984_v41  ;;  %v1734_v59 = vadd.f32 %v5812_v57, %v1733_v52 }
  0xf2   :  { %4815 = vmatmul.mubr.msk.bf16.gmra.mrb[116].mxu0 %vm1176_vm2, %v5179_v39  ;;  %4995 = vmatmul.mubr.msk.bf16.gmra.mrb[116].mxu1 %vm1176_vm2, %v5180_v40  ;;  %v2988_v6 = vmax.f32 %v1742_v56, 0.0  ;;  %v5190_v56 = vld [vmem:[%s6544_s0 + $0x4d0] sm:$0xff]  }
  0xf3   :  { %4818 = vmatprep.mubr.msk.bf16.mxu0 %vm1176_vm2, %v5181_v45  ;;  %4998 = vmatprep.mubr.msk.bf16.mxu1 %vm1176_vm2, %v5182_v46  ;;  %v3304_v61 = vadd.f32 %v3303_v54, %v2985_v53  ;;  %v2986_v63 = vmax.f32 %v1734_v59, 0.0  ;;  %v5188_v45 = vld [vmem:[%s6544_s0 + $0x4c8] sm:$0xff]   ;;  %v5189_v54 = vld [vmem:[%s6544_s0 + $0x200] sm:$0xff]  }
  0xf5   :  { %v4892_v0 = vpop.f32.mrb[12].mxu1  ;;  %v4712_v1 = vpop.f32.mrb[12].mxu0  ;;  %v3305_v7 = vadd.f32 %v3304_v61, %v2986_v63 }
  0xf6   :  { %v2466_v2 = vpop.f32.mrb[13].mxu1  ;;  %v1746_v8 = vpop.f32.mrb[13].mxu0  ;;  %v1755_v20 = vadd.f32 %v4712_v1, %v5812_v57  ;;  %v2475_v22 = vadd.f32 %v4892_v0, %v5812_v57 }
  0xf7   :  { %v2467_v9 = vadd.f32 %v5812_v57, %v2466_v2  ;;  %v4893_v10 = vpop.f32.mrb[14].mxu1  ;;  %v1747_v14 = vadd.f32 %v5812_v57, %v1746_v8  ;;  %v4713_v16 = vpop.f32.mrb[14].mxu0  ;;  %v3306_v18 = vadd.f32 %v3305_v7, %v2987_v60 }
  0xf8   :  { %v2469_v17 = vpop.f32.mrb[15].mxu1  ;;  %v1749_v21 = vpop.f32.mrb[15].mxu0  ;;  %v1758_v27 = vadd.f32 %v4713_v16, %v5812_v57  ;;  %v2478_v30 = vadd.f32 %v4893_v10, %v5812_v57  ;;  %v2991_v32 = vmax.f32 %v1755_v20, 0.0  ;;  %v3171_v36 = vmax.f32 %v2475_v22, 0.0 }
  0xf9   :  { %v2470_v23 = vadd.f32 %v5812_v57, %v2469_v17  ;;  %v2989_v24 = vmax.f32 %v1747_v14, 0.0  ;;  %v3307_v26 = vadd.f32 %v3306_v18, %v2988_v6  ;;  %v1750_v28 = vadd.f32 %v5812_v57, %v1749_v21 }
  0xfa   :  { %4819 = vmatmul.mubr.msk.bf16.gmra.mrb[120].mxu0 %vm1176_vm2, %v5183_v3  ;;  %4999 = vmatmul.mubr.msk.bf16.gmra.mrb[120].mxu1 %vm1176_vm2, %v5184_v5  ;;  %v3169_v29 = vmax.f32 %v2467_v9, 0.0  ;;  %v2992_v46 = vmax.f32 %v1758_v27, 0.0  ;;  %v3172_v50 = vmax.f32 %v2478_v30, 0.0  ;;  %v5192_v27 = vld [vmem:[%s6544_s0 + $0x4d8] sm:$0xff]  }
  0xfb   :  { %v3170_v31 = vmax.f32 %v2470_v23, 0.0  ;;  %4822 = vmatprep.mubr.msk.bf16.mxu0 %vm1176_vm2, %v5185_v12  ;;  %5002 = vmatprep.mubr.msk.bf16.mxu1 %vm1176_vm2, %v5186_v13  ;;  %v3308_v33 = vadd.f32 %v3307_v26, %v2989_v24  ;;  %v2990_v34 = vmax.f32 %v1750_v28, 0.0  ;;  %v5191_v26 = vld [vmem:[%s6544_s0 + $0x208] sm:$0xff]  }
  0xfd   :  { %v3519_v39 = vadd.f32 %v3170_v31, %v3169_v29  ;;  %v4896_v40 = vpop.f32.mrb[16].mxu1  ;;  %v4716_v41 = vpop.f32.mrb[16].mxu0  ;;  %v3309_v47 = vadd.f32 %v3308_v33, %v2990_v34 }
  0xfe   :  { %v2482_v42 = vpop.f32.mrb[17].mxu1  ;;  %v1762_v48 = vpop.f32.mrb[17].mxu0  ;;  %v2491_v61 = vadd.f32 %v4896_v40, %v5812_v57  ;;  %v1771_v1 = vadd.f32 %v4716_v41, %v5812_v57 }
  0xff   :  { %v3520_v51 = vadd.f32 %v3519_v39, %v3171_v36  ;;  %v2483_v52 = vadd.f32 %v5812_v57, %v2482_v42  ;;  %v4897_v53 = vpop.f32.mrb[18].mxu1  ;;  %v1763_v59 = vadd.f32 %v5812_v57, %v1762_v48  ;;  %v4717_v60 = vpop.f32.mrb[18].mxu0  ;;  %v3310_v0 = vadd.f32 %v3309_v47, %v2991_v32  ;;  %v5193_v36 = vld [vmem:[%s6544_s0 + $0x210] sm:$0xff]   ;;  %v5194_v39 = vld [vmem:[%s6544_s0 + $0x4e0] sm:$0xff]  }
 0x100   :  { %v2485_v63 = vpop.f32.mrb[19].mxu1  ;;  %v1765_v2 = vpop.f32.mrb[19].mxu0  ;;  %v1774_v9 = vadd.f32 %v4717_v60, %v5812_v57  ;;  %v2494_v13 = vadd.f32 %v4897_v53, %v5812_v57  ;;  %v2995_v16 = vmax.f32 %v1771_v1, 0.0  ;;  %v3175_v20 = vmax.f32 %v2491_v61, 0.0 }
 0x101   :  { %v3173_v3 = vmax.f32 %v2483_v52, 0.0  ;;  %v3521_v5 = vadd.f32 %v3520_v51, %v3172_v50  ;;  %v2486_v6 = vadd.f32 %v5812_v57, %v2485_v63  ;;  %v2993_v7 = vmax.f32 %v1763_v59, 0.0 }
 0x102   :  { %4823 = vmatmul.mubr.msk.bf16.gmra.mrb[124].mxu0 %vm1176_vm2, %v5187_v43  ;;  %5003 = vmatmul.mubr.msk.bf16.gmra.mrb[124].mxu1 %vm1176_vm2, %v5188_v45  ;;  %v3311_v8 = vadd.f32 %v3310_v0, %v2992_v46  ;;  %v1766_v10 = vadd.f32 %v5812_v57, %v1765_v2  ;;  %v2996_v28 = vmax.f32 %v1774_v9, 0.0  ;;  %v3176_v31 = vmax.f32 %v2494_v13, 0.0  ;;  %v5196_v9 = vld [vmem:[%s6544_s0 + $0x4e8] sm:$0xff]  }
 0x103   :  { %v3522_v12 = vadd.f32 %v3521_v5, %v3173_v3  ;;  %v3174_v14 = vmax.f32 %v2486_v6, 0.0  ;;  %4826 = vmatprep.mubr.msk.bf16.mxu0 %vm1176_vm2, %v5189_v54  ;;  %5006 = vmatprep.mubr.msk.bf16.mxu1 %vm1176_vm2, %v5190_v56 }
 0x104   :  { %v3312_v17 = vadd.f32 %v3311_v8, %v2993_v7  ;;  %v2994_v18 = vmax.f32 %v1766_v10, 0.0  ;;  %v5195_v8 = vld [vmem:[%s6544_s0 + $0x218] sm:$0xff]  }
 0x105   :  { %v3523_v21 = vadd.f32 %v3522_v12, %v3174_v14  ;;  %v4900_v22 = vpop.f32.mrb[20].mxu1  ;;  %v4720_v23 = vpop.f32.mrb[20].mxu0 }
 0x106   :  { %v2498_v24 = vpop.f32.mrb[21].mxu1  ;;  %v3313_v29 = vadd.f32 %v3312_v17, %v2994_v18  ;;  %v1778_v30 = vpop.f32.mrb[21].mxu0  ;;  %v2507_v42 = vadd.f32 %v4900_v22, %v5812_v57  ;;  %v1787_v46 = vadd.f32 %v4720_v23, %v5812_v57 }
 0x107   :  { %v3524_v32 = vadd.f32 %v3523_v21, %v3175_v20  ;;  %v2499_v33 = vadd.f32 %v5812_v57, %v2498_v24  ;;  %v4901_v34 = vpop.f32.mrb[22].mxu1  ;;  %v1779_v40 = vadd.f32 %v5812_v57, %v1778_v30  ;;  %v4721_v41 = vpop.f32.mrb[22].mxu0  ;;  %v5197_v20 = vld [vmem:[%s6544_s0 + $0x220] sm:$0xff]   ;;  %v5198_v21 = vld [vmem:[%s6544_s0 + $0x4f0] sm:$0xff]  }
 0x108   :  { %v2501_v43 = vpop.f32.mrb[23].mxu1  ;;  %v3314_v45 = vadd.f32 %v3313_v29, %v2995_v16  ;;  %v1781_v47 = vpop.f32.mrb[23].mxu0  ;;  %v1790_v54 = vadd.f32 %v4721_v41, %v5812_v57  ;;  %v2510_v60 = vadd.f32 %v4901_v34, %v5812_v57  ;;  %v2999_v63 = vmax.f32 %v1787_v46, 0.0 }
 0x109   :  { %v3177_v48 = vmax.f32 %v2499_v33, 0.0  ;;  %v3525_v50 = vadd.f32 %v3524_v32, %v3176_v31  ;;  %v2502_v51 = vadd.f32 %v5812_v57, %v2501_v43  ;;  %v2997_v52 = vmax.f32 %v1779_v40, 0.0 }
 0x10a   :  { %4827 = vmatmul.mubr.msk.bf16.gmra.mrb[128].mxu0 %vm1176_vm2, %v5191_v26  ;;  %5007 = vmatmul.mubr.msk.bf16.gmra.mrb[128].mxu1 %vm1176_vm2, %v5192_v27  ;;  %v3315_v53 = vadd.f32 %v3314_v45, %v2996_v28  ;;  %v1782_v56 = vadd.f32 %v5812_v57, %v1781_v47  ;;  %v3179_v2 = vmax.f32 %v2507_v42, 0.0  ;;  %v3000_v10 = vmax.f32 %v1790_v54, 0.0  ;;  %v5200_v54 = vld [vmem:[%s6544_s0 + $0x4f8] sm:$0xff]  }
 0x10b   :  { %v3526_v59 = vadd.f32 %v3525_v50, %v3177_v48  ;;  %v3178_v61 = vmax.f32 %v2502_v51, 0.0  ;;  %4830 = vmatprep.mubr.msk.bf16.mxu0 %vm1176_vm2, %v5193_v36  ;;  %5010 = vmatprep.mubr.msk.bf16.mxu1 %vm1176_vm2, %v5194_v39  ;;  %v3180_v14 = vmax.f32 %v2510_v60, 0.0 }
 0x10c   :  { %v3316_v0 = vadd.f32 %v3315_v53, %v2997_v52  ;;  %v2998_v1 = vmax.f32 %v1782_v56, 0.0  ;;  %v5199_v53 = vld [vmem:[%s6544_s0 + $0x228] sm:$0xff]  }
 0x10d   :  { %v3527_v3 = vadd.f32 %v3526_v59, %v3178_v61  ;;  %v4904_v5 = vpop.f32.mrb[24].mxu1  ;;  %v4724_v6 = vpop.f32.mrb[24].mxu0 }
 0x10e   :  { %v2514_v7 = vpop.f32.mrb[25].mxu1  ;;  %v3317_v12 = vadd.f32 %v3316_v0, %v2998_v1  ;;  %v1794_v13 = vpop.f32.mrb[25].mxu0  ;;  %v2523_v24 = vadd.f32 %v4904_v5, %v5812_v57  ;;  %v1803_v28 = vadd.f32 %v4724_v6, %v5812_v57 }
 0x10f   :  { %v3528_v16 = vadd.f32 %v3527_v3, %v3179_v2  ;;  %v2515_v17 = vadd.f32 %v5812_v57, %v2514_v7  ;;  %v4905_v18 = vpop.f32.mrb[26].mxu1  ;;  %v1795_v22 = vadd.f32 %v5812_v57, %v1794_v13  ;;  %v4725_v23 = vpop.f32.mrb[26].mxu0  ;;  %v5201_v2 = vld [vmem:[%s6544_s0 + $0x230] sm:$0xff]  }
 0x110   :  { %v2517_v26 = vpop.f32.mrb[27].mxu1  ;;  %v3318_v27 = vadd.f32 %v3317_v12, %v2999_v63  ;;  %v1797_v29 = vpop.f32.mrb[27].mxu0  ;;  %v1806_v36 = vadd.f32 %v4725_v23, %v5812_v57  ;;  %v2526_v41 = vadd.f32 %v4905_v18, %v5812_v57  ;;  %v3003_v43 = vmax.f32 %v1803_v28, 0.0 }
 0x111   :  { %v3181_v30 = vmax.f32 %v2515_v17, 0.0  ;;  %v3529_v31 = vadd.f32 %v3528_v16, %v3180_v14  ;;  %v2518_v32 = vadd.f32 %v5812_v57, %v2517_v26  ;;  %v3001_v33 = vmax.f32 %v1795_v22, 0.0 }
 0x112   :  { %4831 = vmatmul.mubr.msk.bf16.gmra.mrb[132].mxu0 %vm1176_vm2, %v5195_v8  ;;  %5011 = vmatmul.mubr.msk.bf16.gmra.mrb[132].mxu1 %vm1176_vm2, %v5196_v9  ;;  %v3319_v34 = vadd.f32 %v3318_v27, %v3000_v10  ;;  %v1798_v39 = vadd.f32 %v5812_v57, %v1797_v29  ;;  %v3183_v47 = vmax.f32 %v2523_v24, 0.0  ;;  %v3004_v56 = vmax.f32 %v1806_v36, 0.0  ;;  %v3707_v36 = vld [vmem:[%s6547_s3] sm:$0x1] }
 0x113   :  { %v3530_v40 = vadd.f32 %v3529_v31, %v3181_v30  ;;  %v3182_v42 = vmax.f32 %v2518_v32, 0.0  ;;  %4834 = vmatprep.mubr.msk.bf16.mxu0 %vm1176_vm2, %v5197_v20  ;;  %5014 = vmatprep.mubr.msk.bf16.mxu1 %vm1176_vm2, %v5198_v21  ;;  %v3184_v61 = vmax.f32 %v2526_v41, 0.0  ;;  %v5298_v24 = vmov 0   ;;  %v5202_v32 = vld [vmem:[%s6544_s0 + $0x238] sm:$0xff]  }
 0x114   :  { %v3320_v45 = vadd.f32 %v3319_v34, %v3001_v33  ;;  %v3002_v46 = vmax.f32 %v1798_v39, 0.0 }
 0x115   :  { %v3531_v48 = vadd.f32 %v3530_v40, %v3182_v42  ;;  %v4908_v50 = vpop.f32.mrb[28].mxu1  ;;  %v4728_v51 = vpop.f32.mrb[28].mxu0 }
 0x116   :  { %v2530_v52 = vpop.f32.mrb[29].mxu1  ;;  %v3321_v59 = vadd.f32 %v3320_v45, %v3002_v46  ;;  %v1810_v60 = vpop.f32.mrb[29].mxu0  ;;  %v2539_v6 = vadd.f32 %v4908_v50, %v5812_v57  ;;  %v1819_v9 = vadd.f32 %v4728_v51, %v5812_v57 }
 0x117   :  { %v3532_v63 = vadd.f32 %v3531_v48, %v3183_v47  ;;  %v2531_v0 = vadd.f32 %v5812_v57, %v2530_v52  ;;  %v4909_v1 = vpop.f32.mrb[30].mxu1  ;;  %v1811_v3 = vadd.f32 %v5812_v57, %v1810_v60  ;;  %v4729_v5 = vpop.f32.mrb[30].mxu0  ;;  %v5203_v47 = vld [vmem:[%s6544_s0 + $0x240] sm:$0xff]   ;;  %v5209_v48 = vld [vmem:[%s6548_s4 + $0x8] ss:$12 sps:$4 sm:$0xff]  }
 0x118   :  { %v2533_v7 = vpop.f32.mrb[31].mxu1  ;;  %v3322_v8 = vadd.f32 %v3321_v59, %v3003_v43  ;;  %v1813_v10 = vpop.f32.mrb[31].mxu0  ;;  %v1822_v18 = vadd.f32 %v4729_v5, %v5812_v57  ;;  %v2542_v22 = vadd.f32 %v4909_v1, %v5812_v57  ;;  %v3007_v26 = vmax.f32 %v1819_v9, 0.0 }
 0x119   :  { %v3185_v12 = vmax.f32 %v2531_v0, 0.0  ;;  %v3533_v13 = vadd.f32 %v3532_v63, %v3184_v61  ;;  %v2534_v14 = vadd.f32 %v5812_v57, %v2533_v7  ;;  %v3005_v16 = vmax.f32 %v1811_v3, 0.0 }
 0x11a   :  { %4835 = vmatmul.mubr.msk.bf16.gmra.mrb[136].mxu0 %vm1176_vm2, %v5199_v53  ;;  %5015 = vmatmul.mubr.msk.bf16.gmra.mrb[136].mxu1 %vm1176_vm2, %v5200_v54  ;;  %v3323_v17 = vadd.f32 %v3322_v8, %v3004_v56  ;;  %v1814_v20 = vadd.f32 %v5812_v57, %v1813_v10  ;;  %v3187_v29 = vmax.f32 %v2539_v6, 0.0  ;;  %v3008_v39 = vmax.f32 %v1822_v18, 0.0 }
 0x11b   :  { %v3534_v21 = vadd.f32 %v3533_v13, %v3185_v12  ;;  %v3186_v23 = vmax.f32 %v2534_v14, 0.0  ;;  %4838 = vmatprep.mubr.msk.bf16.mxu0 %vm1176_vm2, %v5201_v2  ;;  %3781 = vmatprep.mubr.bf16.mxu1 %v5298_v24  ;;  %v3188_v42 = vmax.f32 %v2542_v22, 0.0 }
 0x11c   :  { %v3324_v27 = vadd.f32 %v3323_v17, %v3005_v16  ;;  %v3006_v28 = vmax.f32 %v1814_v20, 0.0  ;;  %v5204_v17 = vld [vmem:[%s6544_s0 + $0x248] sm:$0xff]  }
 0x11d   :  { %v3535_v30 = vadd.f32 %v3534_v21, %v3186_v23  ;;  %v4912_v31 = vpop.f32.mrb[32].mxu1  ;;  %v4732_v33 = vpop.f32.mrb[32].mxu0 }
 0x11e   :  { %v2546_v34 = vpop.f32.mrb[33].mxu1  ;;  %v3325_v40 = vadd.f32 %v3324_v27, %v3006_v28  ;;  %v1826_v41 = vpop.f32.mrb[33].mxu0  ;;  %v1835_v54 = vadd.f32 %v4732_v33, %v5812_v57  ;;  %v2555_v59 = vadd.f32 %v4912_v31, %v5812_v57  ;;  %v5205_v27 = vld [vmem:[%s6544_s0 + $0x250] sm:$0xff]  }
 0x11f   :  { %v3536_v43 = vadd.f32 %v3535_v30, %v3187_v29  ;;  %v2547_v45 = vadd.f32 %v5812_v57, %v2546_v34  ;;  %v4913_v46 = vpop.f32.mrb[34].mxu1  ;;  %v1827_v50 = vadd.f32 %v5812_v57, %v1826_v41  ;;  %v4733_v51 = vpop.f32.mrb[34].mxu0 }
 0x120   :  { %v2549_v52 = vpop.f32.mrb[35].mxu1  ;;  %v3326_v53 = vadd.f32 %v3325_v40, %v3007_v26  ;;  %v1829_v56 = vpop.f32.mrb[35].mxu0  ;;  %v1838_v2 = vadd.f32 %v4733_v51, %v5812_v57  ;;  %v2558_v6 = vadd.f32 %v4913_v46, %v5812_v57  ;;  %v3011_v8 = vmax.f32 %v1835_v54, 0.0 }
 0x121   :  { %v3189_v60 = vmax.f32 %v2547_v45, 0.0  ;;  %v3537_v61 = vadd.f32 %v3536_v43, %v3188_v42  ;;  %v2550_v63 = vadd.f32 %v5812_v57, %v2549_v52  ;;  %v3009_v1 = vmax.f32 %v1827_v50, 0.0 }
 0x122   :  { %4839 = vmatmul.mubr.msk.bf16.gmra.mrb[140].mxu0 %vm1176_vm2, %v5202_v32  ;;  %4472 = vmatmul.mubr.msk.bf16.vlgmr.msra.gmra.mrb[140].mxu1 %vm3745_vm3, %v3707_v36  ;;  %v6031_v0 = vadd.f32 %v3326_v53, %v3008_v39  ;;  %v1830_v3 = vadd.f32 %v5812_v57, %v1829_v56  ;;  %v3191_v10 = vmax.f32 %v2555_v59, 0.0  ;;  %v3012_v18 = vmax.f32 %v1838_v2, 0.0 }
 0x123   :  { %v3538_v5 = vadd.f32 %v3537_v61, %v3189_v60  ;;  %v3190_v7 = vmax.f32 %v2550_v63, 0.0  ;;  %4842 = vmatprep.mubr.msk.bf16.mxu0 %vm1176_vm2, %v5203_v47  ;;  %5019 = vmatpush3.bf16.msra.mxu1 %v5209_v48  ;;  %v3192_v22 = vmax.f32 %v2558_v6, 0.0 }
 0x124   :  { %v3010_v9 = vmax.f32 %v1830_v3, 0.0  ;;  %5020 = vmatprep.mubr.msk.bf16.mxu1 %vm5299_vm4, %v5297_v38 }
 0x125   :  { %v3539_v12 = vadd.f32 %v3538_v5, %v3190_v7  ;;  %v4916_v13 = vpop.f32.mrb[36].mxu1  ;;  %v4736_v14 = vpop.f32.mrb[36].mxu0  ;;  %v5207_v7 = vld [vmem:[%s6544_s0 + $0x260] sm:$0xff]  }
 0x126   :  { %v2562_v16 = vpop.f32.mrb[37].mxu1  ;;  %v3334_v20 = vadd.f32 %v3010_v9, %v3009_v1  ;;  %v1842_v21 = vpop.f32.mrb[37].mxu0  ;;  %v2571_v30 = vadd.f32 %v4916_v13, %v5812_v57  ;;  %v1851_v41 = vadd.f32 %v4736_v14, %v5812_v57 }
 0x127   :  { %v3540_v23 = vadd.f32 %v3539_v12, %v3191_v10  ;;  %v2563_v24 = vadd.f32 %v5812_v57, %v2562_v16  ;;  %v4917_v26 = vpop.f32.mrb[38].mxu1  ;;  %v1843_v28 = vadd.f32 %v5812_v57, %v1842_v21  ;;  %v4737_v29 = vpop.f32.mrb[38].mxu0 }
 0x128   :  { %v2565_v31 = vpop.f32.mrb[39].mxu1  ;;  %v3335_v32 = vadd.f32 %v3334_v20, %v3011_v8  ;;  %v1845_v33 = vpop.f32.mrb[39].mxu0  ;;  %v2574_v42 = vadd.f32 %v4917_v26, %v5812_v57  ;;  %v1854_v48 = vadd.f32 %v4737_v29, %v5812_v57  ;;  %v3195_v52 = vmax.f32 %v2571_v30, 0.0 }
 0x129   :  { %v3193_v34 = vmax.f32 %v2563_v24, 0.0  ;;  %v3541_v39 = vadd.f32 %v3540_v23, %v3192_v22  ;;  %v2566_v40 = vadd.f32 %v5812_v57, %v2565_v31  ;;  %v3013_v43 = vmax.f32 %v1843_v28, 0.0 }
 0x12a   :  { %4843 = vmatmul.mubr.msk.bf16.gmra.mrb[144].mxu0 %vm1176_vm2, %v5204_v17  ;;  %5021 = vmatmul.mubr.msk.bf16.vlgmr.msra.gmra.mrb[144].mxu1 %vm3745_vm3, %v3707_v36  ;;  %v3336_v45 = vadd.f32 %v3335_v32, %v3012_v18  ;;  %v1846_v50 = vadd.f32 %v5812_v57, %v1845_v33  ;;  %v3015_v56 = vmax.f32 %v1851_v41, 0.0  ;;  %v3196_v61 = vmax.f32 %v2574_v42, 0.0  ;;  %v5206_v36 = vld [vmem:[%s6544_s0 + $0x258] sm:$0xff]  }
 0x12b   :  { %v3542_v46 = vadd.f32 %v3541_v39, %v3193_v34  ;;  %v3194_v47 = vmax.f32 %v2566_v40, 0.0  ;;  %4846 = vmatprep.mubr.msk.bf16.mxu0 %vm1176_vm2, %v5205_v27  ;;  %v3016_v1 = vmax.f32 %v1854_v48, 0.0 }
 0x12c   :  { %v3337_v51 = vadd.f32 %v3336_v45, %v3013_v43  ;;  %v3014_v59 = vmax.f32 %v1846_v50, 0.0  ;;  %v5208_v43 = vld [vmem:[%s6544_s0 + $0x268] sm:$0xff]  }
 0x12d   :  { %v3543_v53 = vadd.f32 %v3542_v46, %v3194_v47  ;;  %v4920_v54 = vpop.f32.mrb[40].mxu1  ;;  %v4740_v60 = vpop.f32.mrb[40].mxu0 }
 0x12e   :  { %v2578_v63 = vpop.f32.mrb[41].mxu1  ;;  %v1858_v2 = vpop.f32.mrb[41].mxu0  ;;  %v3338_v8 = vadd.f32 %v3337_v51, %v3014_v59  ;;  %v2587_v12 = vadd.f32 %v4920_v54, %v5812_v57  ;;  %v1867_v14 = vadd.f32 %v4740_v60, %v5812_v57  ;;  %v5210_v51 = vld [vmem:[%s6544_s0 + $0x270] sm:$0xff]  }
 0x12f   :  { %v3544_v3 = vadd.f32 %v3543_v53, %v3195_v52  ;;  %v2579_v5 = vadd.f32 %v5812_v57, %v2578_v63  ;;  %v4921_v6 = vpop.f32.mrb[42].mxu1  ;;  %v1859_v9 = vadd.f32 %v5812_v57, %v1858_v2  ;;  %v4741_v10 = vpop.f32.mrb[42].mxu0 }
 0x130   :  { %v2581_v13 = vpop.f32.mrb[43].mxu1  ;;  %v1861_v16 = vpop.f32.mrb[43].mxu0  ;;  %v3339_v21 = vadd.f32 %v3338_v8, %v3015_v56  ;;  %v2590_v22 = vadd.f32 %v4921_v6, %v5812_v57  ;;  %v1870_v24 = vadd.f32 %v4741_v10, %v5812_v57  ;;  %v3199_v31 = vmax.f32 %v2587_v12, 0.0 }
 0x131   :  { %v3197_v17 = vmax.f32 %v2579_v5, 0.0  ;;  %v3545_v18 = vadd.f32 %v3544_v3, %v3196_v61  ;;  %v2582_v20 = vadd.f32 %v5812_v57, %v2581_v13  ;;  %v3017_v23 = vmax.f32 %v1859_v9, 0.0 }
 0x132   :  { %4847 = vmatmul.mubr.msk.bf16.gmra.mrb[148].mxu0 %vm1176_vm2, %v5206_v36  ;;  %v1862_v26 = vadd.f32 %v5812_v57, %v1861_v16  ;;  %v3340_v29 = vadd.f32 %v3339_v21, %v3016_v1  ;;  %v3019_v34 = vmax.f32 %v1867_v14, 0.0  ;;  %v3200_v41 = vmax.f32 %v2590_v22, 0.0 }
 0x133   :  { %v3546_v27 = vadd.f32 %v3545_v18, %v3197_v17  ;;  %v3198_v28 = vmax.f32 %v2582_v20, 0.0  ;;  %4850 = vmatprep.mubr.msk.bf16.mxu0 %vm1176_vm2, %v5207_v7  ;;  %v3020_v45 = vmax.f32 %v1870_v24, 0.0  ;;  %v5211_v20 = vld [vmem:[%s6544_s0 + $0x278] sm:$0xff]  }
 0x134   :  { %v3018_v30 = vmax.f32 %v1862_v26, 0.0  ;;  %v3341_v39 = vadd.f32 %v3340_v29, %v3017_v23 }
 0x135   :  { %v3547_v32 = vadd.f32 %v3546_v27, %v3198_v28  ;;  %v4924_v33 = vpop.f32.mrb[44].mxu1  ;;  %v4744_v40 = vpop.f32.mrb[44].mxu0  ;;  %v5212_v28 = vld [vmem:[%s6544_s0 + $0x280] sm:$0xff]  }
 0x136   :  { %v2594_v42 = vpop.f32.mrb[45].mxu1  ;;  %v1874_v46 = vpop.f32.mrb[45].mxu0  ;;  %v3342_v52 = vadd.f32 %v3341_v39, %v3018_v30  ;;  %v2603_v61 = vadd.f32 %v4924_v33, %v5812_v57  ;;  %v1883_v1 = vadd.f32 %v4744_v40, %v5812_v57 }
 0x137   :  { %v3548_v47 = vadd.f32 %v3547_v32, %v3199_v31  ;;  %v2595_v48 = vadd.f32 %v5812_v57, %v2594_v42  ;;  %v4925_v50 = vpop.f32.mrb[46].mxu1  ;;  %v1875_v53 = vadd.f32 %v5812_v57, %v1874_v46  ;;  %v4745_v54 = vpop.f32.mrb[46].mxu0 }
 0x138   :  { %v2597_v56 = vpop.f32.mrb[47].mxu1  ;;  %v1877_v59 = vpop.f32.mrb[47].mxu0  ;;  %v3343_v36 = vadd.f32 %v3342_v52, %v3019_v34  ;;  %v2606_v6 = vadd.f32 %v4925_v50, %v5812_v57  ;;  %v1886_v9 = vadd.f32 %v4745_v54, %v5812_v57  ;;  %v3203_v12 = vmax.f32 %v2603_v61, 0.0 }
 0x139   :  { %v6080_v60 = vadd.f32 %v3548_v47, %v3200_v41  ;;  %v2598_v63 = vadd.f32 %v5812_v57, %v2597_v56  ;;  %v3021_v2 = vmax.f32 %v1875_v53, 0.0  ;;  %v1878_v3 = vadd.f32 %v5812_v57, %v1877_v59 }
 0x13a   :  { %4851 = vmatmul.mubr.msk.bf16.gmra.mrb[152].mxu0 %vm1176_vm2, %v5208_v43  ;;  %v3201_v5 = vmax.f32 %v2595_v48, 0.0  ;;  %v3344_v8 = vadd.f32 %v3343_v36, %v3020_v45  ;;  %v3023_v21 = vmax.f32 %v1883_v1, 0.0  ;;  %v3204_v23 = vmax.f32 %v2606_v6, 0.0  ;;  %v5213_v1 = vld [vmem:[%s6544_s0 + $0x288] sm:$0xff]  }
 0x13b   :  { %v3202_v7 = vmax.f32 %v2598_v63, 0.0  ;;  %4854 = vmatprep.mubr.msk.bf16.mxu0 %vm1176_vm2, %v5210_v51  ;;  %v3022_v10 = vmax.f32 %v1878_v3, 0.0  ;;  %v3024_v32 = vmax.f32 %v1886_v9, 0.0 }
 0x13c   :  { %v3345_v16 = vadd.f32 %v3344_v8, %v3021_v2 }
 0x13d   :  { %v3556_v13 = vadd.f32 %v3202_v7, %v3201_v5  ;;  %v4928_v14 = vpop.f32.mrb[48].mxu1  ;;  %v4748_v17 = vpop.f32.mrb[48].mxu0 }
 0x13e   :  { %v2610_v18 = vpop.f32.mrb[49].mxu1  ;;  %v1890_v22 = vpop.f32.mrb[49].mxu0  ;;  %v3346_v29 = vadd.f32 %v3345_v16, %v3022_v10  ;;  %v2619_v39 = vadd.f32 %v4928_v14, %v5812_v57  ;;  %v1899_v45 = vadd.f32 %v4748_v17, %v5812_v57  ;;  %v5214_v10 = vld [vmem:[%s6544_s0 + $0x290] sm:$0xff]  }
 0x13f   :  { %v3557_v24 = vadd.f32 %v3556_v13, %v3203_v12  ;;  %v2611_v26 = vadd.f32 %v5812_v57, %v2610_v18  ;;  %v4929_v27 = vpop.f32.mrb[50].mxu1  ;;  %v4749_v30 = vpop.f32.mrb[50].mxu0  ;;  %v1891_v33 = vadd.f32 %v5812_v57, %v1890_v22 }
 0x140   :  { %v2613_v31 = vpop.f32.mrb[51].mxu1  ;;  %v1893_v34 = vpop.f32.mrb[51].mxu0  ;;  %v3347_v43 = vadd.f32 %v3346_v29, %v3023_v21  ;;  %v2622_v48 = vadd.f32 %v4929_v27, %v5812_v57  ;;  %v1902_v53 = vadd.f32 %v4749_v30, %v5812_v57  ;;  %v3207_v54 = vmax.f32 %v2619_v39, 0.0 }
 0x141   :  { %v3205_v40 = vmax.f32 %v2611_v26, 0.0  ;;  %v3558_v41 = vadd.f32 %v3557_v24, %v3204_v23  ;;  %v2614_v42 = vadd.f32 %v5812_v57, %v2613_v31  ;;  %v3025_v46 = vmax.f32 %v1891_v33, 0.0 }
 0x142   :  { %4855 = vmatmul.mubr.msk.bf16.gmra.mrb[156].mxu0 %vm1176_vm2, %v5211_v20  ;;  %v1894_v51 = vadd.f32 %v5812_v57, %v1893_v34  ;;  %v3348_v52 = vadd.f32 %v3347_v43, %v3024_v32  ;;  %v3027_v2 = vmax.f32 %v1899_v45, 0.0  ;;  %v3208_v6 = vmax.f32 %v2622_v48, 0.0 }
 0x143   :  { %v3559_v47 = vadd.f32 %v3558_v41, %v3205_v40  ;;  %v3206_v50 = vmax.f32 %v2614_v42, 0.0  ;;  %4858 = vmatprep.mubr.msk.bf16.mxu0 %vm1176_vm2, %v5212_v28  ;;  %v3028_v16 = vmax.f32 %v1902_v53, 0.0 }
 0x144   :  { %v3026_v61 = vmax.f32 %v1894_v51, 0.0  ;;  %v3349_v3 = vadd.f32 %v3348_v52, %v3025_v46 }
 0x145   :  { %v3560_v56 = vadd.f32 %v3559_v47, %v3206_v50  ;;  %v4932_v59 = vpop.f32.mrb[52].mxu1  ;;  %v4752_v63 = vpop.f32.mrb[52].mxu0  ;;  %v5215_v47 = vld [vmem:[%s6544_s0 + $0x298] sm:$0xff]  }
 0x146   :  { %v2626_v36 = vpop.f32.mrb[53].mxu1  ;;  %v1906_v5 = vpop.f32.mrb[53].mxu0  ;;  %v3350_v17 = vadd.f32 %v3349_v3, %v3026_v61  ;;  %v2635_v20 = vadd.f32 %v4932_v59, %v5812_v57  ;;  %v1915_v26 = vadd.f32 %v4752_v63, %v5812_v57  ;;  %v5216_v59 = vld [vmem:[%s6544_s0 + $0x2a0] sm:$0xff]  }
 0x147   :  { %v3561_v7 = vadd.f32 %v3560_v56, %v3207_v54  ;;  %v2627_v8 = vadd.f32 %v5812_v57, %v2626_v36  ;;  %v4933_v9 = vpop.f32.mrb[54].mxu1  ;;  %v1907_v12 = vadd.f32 %v5812_v57, %v1906_v5  ;;  %v4753_v13 = vpop.f32.mrb[54].mxu0 }
 0x148   :  { %v2629_v14 = vpop.f32.mrb[55].mxu1  ;;  %v1909_v18 = vpop.f32.mrb[55].mxu0  ;;  %v3351_v24 = vadd.f32 %v3350_v17, %v3027_v2  ;;  %v2638_v30 = vadd.f32 %v4933_v9, %v5812_v57  ;;  %v1918_v33 = vadd.f32 %v4753_v13, %v5812_v57  ;;  %v3211_v39 = vmax.f32 %v2635_v20, 0.0  ;;  %v6133_v2 = vld [vmem:[%s6546_s2] ss:$0 sm:$0xff] }
 0x149   :  { %v3209_v21 = vmax.f32 %v2627_v8, 0.0  ;;  %v3562_v22 = vadd.f32 %v3561_v7, %v3208_v6  ;;  %v2630_v23 = vadd.f32 %v5812_v57, %v2629_v14  ;;  %v3029_v27 = vmax.f32 %v1907_v12, 0.0 }
 0x14a   :  { %4859 = vmatmul.mubr.msk.bf16.gmra.mrb[160].mxu0 %vm1176_vm2, %v5213_v1  ;;  %v1910_v28 = vadd.f32 %v5812_v57, %v1909_v18  ;;  %v3352_v32 = vadd.f32 %v3351_v24, %v3028_v16  ;;  %v3031_v45 = vmax.f32 %v1915_v26, 0.0  ;;  %v3212_v50 = vmax.f32 %v2638_v30, 0.0  ;;  %v5217_v30 = vld [vmem:[%s6544_s0 + $0x2a8] sm:$0xff]  }
 0x14b   :  { %v3563_v29 = vadd.f32 %v3562_v22, %v3209_v21  ;;  %v3210_v31 = vmax.f32 %v2630_v23, 0.0  ;;  %4862 = vmatprep.mubr.msk.bf16.mxu0 %vm1176_vm2, %v5214_v10  ;;  %v3032_v63 = vmax.f32 %v1918_v33, 0.0  ;;  %v3328_v16 = vrot.slane %v6031_v0, 4 }
 0x14c   :  { %v3030_v34 = vmax.f32 %v1910_v28, 0.0  ;;  %v3353_v46 = vadd.f32 %v3352_v32, %v3029_v27 }
 0x14d   :  { %v3564_v40 = vadd.f32 %v3563_v29, %v3210_v31  ;;  %v4936_v41 = vpop.f32.mrb[56].mxu1  ;;  %v4756_v42 = vpop.f32.mrb[56].mxu0 }
 0x14e   :  { %v2642_v43 = vpop.f32.mrb[57].mxu1  ;;  %v1922_v48 = vpop.f32.mrb[57].mxu0  ;;  %v3354_v36 = vadd.f32 %v3353_v46, %v3030_v34  ;;  %v2651_v3 = vadd.f32 %v6133_v2, %v4936_v41  ;;  %v1931_v8 = vadd.f32 %v6133_v2, %v4756_v42  ;;  %v5218_v41 = vld [vmem:[%s6544_s0 + $0x2b0] sm:$0xff]   ;;  %v3329_v42 = vadd.f32 %v3328_v16, %v6031_v0 }
 0x14f   :  { %v3565_v51 = vadd.f32 %v3564_v40, %v3211_v39  ;;  %v2643_v52 = vadd.f32 %v5812_v57, %v2642_v43  ;;  %v4937_v53 = vpop.f32.mrb[58].mxu1  ;;  %v1923_v54 = vadd.f32 %v5812_v57, %v1922_v48  ;;  %v4757_v56 = vpop.f32.mrb[58].mxu0 }
 0x150   :  { %v2645_v61 = vpop.f32.mrb[59].mxu1  ;;  %v1925_v1 = vpop.f32.mrb[59].mxu0  ;;  %v3355_v7 = vadd.f32 %v3354_v36, %v3031_v45  ;;  %v2654_v13 = vadd.f32 %v6133_v2, %v4937_v53  ;;  %v1934_v18 = vadd.f32 %v6133_v2, %v4757_v56  ;;  %v3215_v21 = vmax.f32 %v2651_v3, 0.0 }
 0x151   :  { %v3213_v5 = vmax.f32 %v2643_v52, 0.0  ;;  %v3566_v6 = vadd.f32 %v3565_v51, %v3212_v50  ;;  %v2646_v57 = vadd.f32 %v6133_v2, %v2645_v61  ;;  %v3033_v9 = vmax.f32 %v1923_v54, 0.0 }
 0x152   :  { %4863 = vmatmul.mubr.msk.bf16.gmra.mrb[164].mxu0 %vm1176_vm2, %v5215_v47  ;;  %v1926_v10 = vadd.f32 %v6133_v2, %v1925_v1  ;;  %v3356_v17 = vadd.f32 %v3355_v7, %v3032_v63  ;;  %v3035_v26 = vmax.f32 %v1931_v8, 0.0  ;;  %v3216_v31 = vmax.f32 %v2654_v13, 0.0  ;;  %v5219_v8 = vld [vmem:[%s6544_s0 + $0x2b8] sm:$0xff]  }
 0x153   :  { %v3567_v12 = vadd.f32 %v3566_v6, %v3213_v5  ;;  %v3214_v14 = vmax.f32 %v2646_v57, 0.0  ;;  %4866 = vmatprep.mubr.msk.bf16.mxu0 %vm1176_vm2, %v5216_v59  ;;  %v3036_v45 = vmax.f32 %v1934_v18, 0.0  ;;  %v5223_v18 = vld [vmem:[%s6550_s6] sm:$0xff]  }
 0x154   :  { %v3034_v20 = vmax.f32 %v1926_v10, 0.0  ;;  %v3357_v27 = vadd.f32 %v3356_v17, %v3033_v9  ;;  %v5222_v9 = vld [vmem:[%s6550_s6 + $0x40] sm:$0xff]   ;;  %v3330_v10 = vrot.slane %v3329_v42, 2 }
 0x155   :  { %v3568_v22 = vadd.f32 %v3567_v12, %v3214_v14  ;;  %v4940_v23 = vpop.f32.mrb[60].mxu1  ;;  %v4760_v24 = vpop.f32.mrb[60].mxu0  ;;  %4663 = vmatprep.subr.bf16.mxu1 %v5222_v9 }
 0x156   :  { %v2658_v28 = vpop.f32.mrb[61].mxu1  ;;  %v1938_v29 = vpop.f32.mrb[61].mxu0  ;;  %v2667_v43 = vadd.f32 %v6133_v2, %v4940_v23  ;;  %v3358_v46 = vadd.f32 %v3357_v27, %v3034_v20  ;;  %v1947_v53 = vadd.f32 %v6133_v2, %v4760_v24  ;;  %v5220_v27 = vld [vmem:[%s6544_s0 + $0x2c0] sm:$0xff]   ;;  %4664 = vmatpush3.bf16.msra.mxu1 %v5223_v18 }
 0x157   :  { %v3569_v32 = vadd.f32 %v3568_v22, %v3215_v21  ;;  %v2659_v33 = vadd.f32 %v6133_v2, %v2658_v28  ;;  %v4941_v34 = vpop.f32.mrb[62].mxu1  ;;  %v1939_v39 = vadd.f32 %v6133_v2, %v1938_v29  ;;  %v4761_v40 = vpop.f32.mrb[62].mxu0 }
 0x158   :  { %v2661_v47 = vpop.f32.mrb[63].mxu1  ;;  %v1941_v48 = vpop.f32.mrb[63].mxu0  ;;  %v2670_v54 = vadd.f32 %v6133_v2, %v4941_v34  ;;  %v3359_v56 = vadd.f32 %v3358_v46, %v3035_v26  ;;  %v1950_v1 = vadd.f32 %v6133_v2, %v4761_v40  ;;  %v3219_v5 = vmax.f32 %v2667_v43, 0.0  ;;  %v5224_v40 = vld [vmem:[%s6550_s6 + $0x48] sm:$0xff]  }
 0x159   :  { %v3217_v50 = vmax.f32 %v2659_v33, 0.0  ;;  %v3570_v51 = vadd.f32 %v3569_v32, %v3216_v31  ;;  %v2662_v52 = vadd.f32 %v6133_v2, %v2661_v47  ;;  %v3037_v59 = vmax.f32 %v1939_v39, 0.0  ;;  %v5225_v47 = vld [vmem:[%s6550_s6 + $0x8] sm:$0xff]   ;;  %4665 = vmatprep.subr.bf16.mxu1 %v5224_v40 }
 0x15a   :  { %4867 = vmatmul.mubr.msk.bf16.gmra.mrb[168].mxu0 %vm1176_vm2, %v5217_v30  ;;  %v1942_v0 = vadd.f32 %v6133_v2, %v1941_v48  ;;  %v3360_v36 = vadd.f32 %v3359_v56, %v3036_v45  ;;  %v3220_v12 = vmax.f32 %v2670_v54, 0.0  ;;  %v3039_v13 = vmax.f32 %v1947_v53, 0.0  ;;  %4666 = vmatpush3.bf16.msra.mxu1 %v5225_v47 }
 0x15b   :  { %v3571_v61 = vadd.f32 %v3570_v51, %v3217_v50  ;;  %v3218_v63 = vmax.f32 %v2662_v52, 0.0  ;;  %4870 = vmatprep.mubr.msk.bf16.mxu0 %vm1176_vm2, %v5218_v41  ;;  %v3040_v28 = vmax.f32 %v1950_v1, 0.0  ;;  %v3331_v48 = vadd.f32 %v3330_v10, %v3329_v42 }
 0x15c   :  { %v3038_v3 = vmax.f32 %v1942_v0, 0.0  ;;  %v3361_v14 = vadd.f32 %v3360_v36, %v3037_v59 }
 0x15d   :  { %v3572_v6 = vadd.f32 %v3571_v61, %v3218_v63  ;;  %v4764_v57 = vpop.f32.mrb[64].mxu0  ;;  %v4944_v7 = vpop.f32.mrb[64].mxu1  ;;  %v5226_v63 = vld [vmem:[%s6550_s6 + $0x50] sm:$0xff]  }
 0x15e   :  { %v1954_v16 = vpop.f32.mrb[65].mxu0  ;;  %v2674_v17 = vpop.f32.mrb[65].mxu1  ;;  %v1963_v21 = vadd.f32 %v6133_v2, %v4764_v57  ;;  %v3362_v29 = vadd.f32 %v3361_v14, %v3038_v3  ;;  %v2683_v32 = vadd.f32 %v6133_v2, %v4944_v7  ;;  %v5221_v57 = vld [vmem:[%s6544_s0 + $0x2c8] sm:$0xff]   ;;  %v5227_v7 = vld [vmem:[%s6550_s6 + $0x10] sm:$0xff]   ;;  %4667 = vmatprep.subr.bf16.mxu1 %v5226_v63 }
 0x15f   :  { %v3573_v20 = vadd.f32 %v3572_v6, %v3219_v5  ;;  %v1955_v22 = vadd.f32 %v6133_v2, %v1954_v16  ;;  %v2675_v23 = vadd.f32 %v6133_v2, %v2674_v17  ;;  %v4765_v24 = vpop.f32.mrb[66].mxu0  ;;  %v4945_v26 = vpop.f32.mrb[66].mxu1  ;;  %4668 = vmatpush3.bf16.msra.mxu1 %v5227_v7 }
 0x160   :  { %v1957_v30 = vpop.f32.mrb[67].mxu0  ;;  %v2677_v31 = vpop.f32.mrb[67].mxu1  ;;  %v1966_v39 = vadd.f32 %v6133_v2, %v4765_v24  ;;  %v3363_v41 = vadd.f32 %v3362_v29, %v3039_v13  ;;  %v3043_v50 = vmax.f32 %v1963_v21, 0.0  ;;  %v2686_v53 = vadd.f32 %v6133_v2, %v4945_v26 }
 0x161   :  { %v3221_v33 = vmax.f32 %v2675_v23, 0.0  ;;  %v3574_v34 = vadd.f32 %v3573_v20, %v3220_v12  ;;  %v3041_v43 = vmax.f32 %v1955_v22, 0.0  ;;  %v1958_v45 = vadd.f32 %v6133_v2, %v1957_v30 }
 0x162   :  { %v2678_v46 = vadd.f32 %v6133_v2, %v2677_v31  ;;  %4871 = vmatmul.mubr.msk.bf16.gmra.mrb[172].mxu0 %vm1176_vm2, %v5219_v8  ;;  %v3364_v52 = vadd.f32 %v3363_v41, %v3040_v28  ;;  %v3223_v59 = vmax.f32 %v2683_v32, 0.0  ;;  %v3044_v42 = vmax.f32 %v1966_v39, 0.0  ;;  %v5229_v32 = vld [vmem:[%s6550_s6 + $0x18] sm:$0xff]  }
 0x163   :  { %v3575_v51 = vadd.f32 %v3574_v34, %v3221_v33  ;;  %4874 = vmatprep.mubr.msk.bf16.mxu0 %vm1176_vm2, %v5220_v27  ;;  %v3042_v54 = vmax.f32 %v1958_v45, 0.0  ;;  %v3332_v8 = vrot.slane %v3331_v48, 1  ;;  %v3224_v16 = vmax.f32 %v2686_v53, 0.0  ;;  %v5228_v27 = vld [vmem:[%s6550_s6 + $0x58] sm:$0xff]  }
 0x164   :  { %v3222_v56 = vmax.f32 %v2678_v46, 0.0  ;;  %v3365_v36 = vrot.slane %v3364_v52, 4  ;;  %4669 = vmatprep.subr.bf16.mxu1 %v5228_v27 }
 0x165   :  { %v4768_v0 = vpop.f32.mrb[68].mxu0  ;;  %v4948_v61 = vpop.f32.mrb[68].mxu1  ;;  %v3371_v1 = vadd.f32 %v3042_v54, %v3041_v43  ;;  %v3333_v33 = vadd.f32 %v3332_v8, %v3331_v48  ;;  %4670 = vmatpush3.bf16.msra.mxu1 %v5229_v32  ;;  %v5230_v48 = vld [vmem:[%s6550_s6 + $0x60] sm:$0xff]  }
 0x166   :  { %v3576_v3 = vadd.f32 %v3575_v51, %v3222_v56  ;;  %v1970_v5 = vpop.f32.mrb[69].mxu0  ;;  %v2690_v6 = vpop.f32.mrb[69].mxu1  ;;  %v3366_v14 = vadd.f32 %v3365_v36, %v3364_v52  ;;  %v1979_v22 = vadd.f32 %v6133_v2, %v4768_v0  ;;  %v2699_v23 = vadd.f32 %v6133_v2, %v4948_v61  ;;  %v5231_v61 = vld [vmem:[%s6550_s6 + $0x20] sm:$0xff]   ;;  %4671 = vmatprep.subr.bf16.mxu1 %v5230_v48 }
 0x167   :  { %v1971_v9 = vadd.f32 %v6133_v2, %v1970_v5  ;;  %v2691_v10 = vadd.f32 %v6133_v2, %v2690_v6  ;;  %v4769_v12 = vpop.f32.mrb[70].mxu0  ;;  %v4949_v13 = vpop.f32.mrb[70].mxu1  ;;  %v3372_v17 = vadd.f32 %v3371_v1, %v3043_v50  ;;  %v3668_v6 = vmul.f32 0.00390625, %v3333_v33 }
 0x168   :  { %v3577_v18 = vadd.f32 %v3576_v3, %v3223_v59  ;;  %v1973_v20 = vpop.f32.mrb[71].mxu0  ;;  %v2693_v21 = vpop.f32.mrb[71].mxu1  ;;  %v3367_v28 = vrot.slane %v3366_v14, 2  ;;  %v1982_v31 = vadd.f32 %v6133_v2, %v4769_v12  ;;  %v2702_v45 = vadd.f32 %v6133_v2, %v4949_v13 }
 0x169   :  { %v3045_v24 = vmax.f32 %v1971_v9, 0.0  ;;  %v3225_v26 = vmax.f32 %v2691_v10, 0.0  ;;  %v3373_v29 = vadd.f32 %v3372_v17, %v3044_v42  ;;  %v1974_v34 = vadd.f32 %v6133_v2, %v1973_v20  ;;  %4672 = vmatpush3.bf16.msra.mxu1 %v5231_v61  ;;  %v5232_v17 = vld [vmem:[%s6550_s6 + $0x68] sm:$0xff]  }
 0x16a   :  { %v3578_v30 = vadd.f32 %v3577_v18, %v3224_v16  ;;  %4875 = vmatmul.mubr.msk.bf16.gmra.mrb[176].mxu0 %vm1176_vm2, %v5221_v57  ;;  %v2694_v39 = vadd.f32 %v6133_v2, %v2693_v21  ;;  %v3368_v40 = vadd.f32 %v3367_v28, %v3366_v14  ;;  %v3047_v46 = vmax.f32 %v1979_v22, 0.0  ;;  %v5233_v22 = vld [vmem:[%s6550_s6 + $0x28] sm:$0xff]   ;;  %4673 = vmatprep.subr.bf16.mxu1 %v5232_v17 }
 0x16b   :  { %v3374_v41 = vadd.f32 %v3373_v29, %v3045_v24  ;;  %v3046_v47 = vmax.f32 %v1974_v34, 0.0  ;;  %v3227_v54 = vmax.f32 %v2699_v23, 0.0  ;;  %v3048_v56 = vmax.f32 %v1982_v31, 0.0 }
 0x16c   :  { %v3579_v43 = vadd.f32 %v3578_v30, %v3225_v26  ;;  %v3226_v50 = vmax.f32 %v2694_v39, 0.0  ;;  %v3369_v53 = vrot.slane %v3368_v40, 1  ;;  %v3228_v7 = vmax.f32 %v2702_v45, 0.0 }
 0x16d   :  { %v4772_v51 = vpop.f32.mrb[72].mxu0  ;;  %v4952_v52 = vpop.f32.mrb[72].mxu1  ;;  %v3375_v63 = vadd.f32 %v3374_v41, %v3046_v47  ;;  %4674 = vmatpush3.bf16.msra.mxu1 %v5233_v22  ;;  %v5235_v47 = vld [vmem:[%s6550_s6 + $0x30] sm:$0xff]  }
 0x16e   :  { %v1986_v59 = vpop.f32.mrb[73].mxu0  ;;  %v2706_v0 = vpop.f32.mrb[73].mxu1  ;;  %v3580_v36 = vadd.f32 %v3579_v43, %v3226_v50  ;;  %v3370_v57 = vadd.f32 %v3369_v53, %v3368_v40  ;;  %v1995_v8 = vadd.f32 %v6133_v2, %v4772_v51  ;;  %v2715_v20 = vadd.f32 %v6133_v2, %v4952_v52 }
 0x16f   :  { %v1987_v42 = vadd.f32 %v6133_v2, %v1986_v59  ;;  %v2707_v1 = vadd.f32 %v6133_v2, %v2706_v0  ;;  %v4773_v3 = vpop.f32.mrb[74].mxu0  ;;  %v4953_v5 = vpop.f32.mrb[74].mxu1  ;;  %v3376_v12 = vadd.f32 %v3375_v63, %v3047_v46  ;;  %v5234_v46 = vld [vmem:[%s6550_s6 + $0x70] sm:$0xff]  }
 0x170   :  { %v1989_v9 = vpop.f32.mrb[75].mxu0  ;;  %v2709_v10 = vpop.f32.mrb[75].mxu1  ;;  %v3581_v13 = vadd.f32 %v3580_v36, %v3227_v54  ;;  %v3669_v18 = vmul.f32 0.00390625, %v3370_v57  ;;  %v1998_v26 = vadd.f32 %v6133_v2, %v4773_v3  ;;  %v2718_v28 = vadd.f32 %v6133_v2, %v4953_v5  ;;  %4675 = vmatprep.subr.bf16.mxu1 %v5234_v46  ;;  %v5236_v3 = vld [vmem:[%s6550_s6 + $0x78] sm:$0xff]  }
 0x171   :  { %v3049_v14 = vmax.f32 %v1987_v42, 0.0  ;;  %v3229_v16 = vmax.f32 %v2707_v1, 0.0  ;;  %v1990_v21 = vadd.f32 %v6133_v2, %v1989_v9  ;;  %v3377_v23 = vadd.f32 %v3376_v12, %v3048_v56  ;;  %4676 = vmatpush3.bf16.msra.mxu1 %v5235_v47 }
 0x172   :  { %v3582_v24 = vadd.f32 %v3581_v13, %v3228_v7  ;;  %v2710_v27 = vadd.f32 %v6133_v2, %v2709_v10  ;;  %v6234_v30 = vsel %vm3688_vm5, %v3669_v18, %v3668_v6  ;;  %v3051_v31 = vmax.f32 %v1995_v8, 0.0  ;;  %v5237_v7 = vld [vmem:[%s6550_s6 + $0x38] sm:$0xff]   ;;  %4677 = vmatprep.subr.bf16.mxu1 %v5236_v3 }
 0x173   :  { %v3050_v29 = vmax.f32 %v1990_v21, 0.0  ;;  %v3378_v32 = vadd.f32 %v3377_v23, %v3049_v14  ;;  %v3231_v41 = vmax.f32 %v2715_v20, 0.0  ;;  %v3052_v50 = vmax.f32 %v1998_v26, 0.0 }
 0x174   :  { %v3583_v33 = vadd.f32 %v3582_v24, %v3229_v16  ;;  %v3230_v34 = vmax.f32 %v2710_v27, 0.0  ;;  %v3232_v56 = vmax.f32 %v2718_v28, 0.0 }
 0x175   :  { %v4776_v39 = vpop.f32.mrb[76].mxu0  ;;  %v4956_v40 = vpop.f32.mrb[76].mxu1  ;;  %v3379_v51 = vadd.f32 %v3378_v32, %v3050_v29  ;;  %4678 = vmatpush3.bf16.msra.mxu1 %v5237_v7 }
 0x176   :  { %v2002_v43 = vpop.f32.mrb[77].mxu0  ;;  %v2722_v45 = vpop.f32.mrb[77].mxu1  ;;  %v3584_v52 = vadd.f32 %v3583_v33, %v3230_v34  ;;  %v2011_v42 = vadd.f32 %v6133_v2, %v4776_v39  ;;  %v2731_v5 = vadd.f32 %v6133_v2, %v4956_v40  ;;  %5024 = vmatprep.subr.bf16.mxu1 %v5297_v38 }
 0x177   :  { %v2003_v48 = vadd.f32 %v6133_v2, %v2002_v43  ;;  %v4777_v53 = vpop.f32.mrb[78].mxu0  ;;  %v4957_v54 = vpop.f32.mrb[78].mxu1  ;;  %v2723_v59 = vadd.f32 %v6133_v2, %v2722_v45  ;;  %v3380_v63 = vadd.f32 %v3379_v51, %v3051_v31 }
 0x178   :  { %v2005_v0 = vpop.f32.mrb[79].mxu0  ;;  %v2725_v61 = vpop.f32.mrb[79].mxu1  ;;  %v3585_v36 = vadd.f32 %v3584_v52, %v3231_v41  ;;  %v2014_v10 = vadd.f32 %v6133_v2, %v4777_v53  ;;  %v2734_v13 = vadd.f32 %v6133_v2, %v4957_v54  ;;  %v3055_v17 = vmax.f32 %v2011_v42, 0.0 }
 0x179   :  { %v3053_v1 = vmax.f32 %v2003_v48, 0.0  ;;  %v2006_v6 = vadd.f32 %v6133_v2, %v2005_v0  ;;  %v2726_v57 = vadd.f32 %v6133_v2, %v2725_v61  ;;  %v3381_v9 = vadd.f32 %v3380_v63, %v3052_v50 }
 0x17a   :  { %v6254_v8 = vadd.f32 %v3585_v36, %v3232_v56  ;;  %v3233_v12 = vmax.f32 %v2723_v59, 0.0  ;;  %v3235_v22 = vmax.f32 %v2731_v5, 0.0  ;;  %v3056_v27 = vmax.f32 %v2014_v10, 0.0 }
 0x17b   :  { %v3054_v14 = vmax.f32 %v2006_v6, 0.0  ;;  %v3234_v16 = vmax.f32 %v2726_v57, 0.0  ;;  %v3382_v18 = vadd.f32 %v3381_v9, %v3053_v1  ;;  %v3236_v34 = vmax.f32 %v2734_v13, 0.0 }
 0x17d   :  { %v4780_v20 = vpop.f32.mrb[80].mxu0  ;;  %v4960_v21 = vpop.f32.mrb[80].mxu1  ;;  %v3593_v23 = vadd.f32 %v3234_v16, %v3233_v12  ;;  %v3383_v28 = vadd.f32 %v3382_v18, %v3054_v14 }
 0x17e   :  { %v2018_v24 = vpop.f32.mrb[81].mxu0  ;;  %v2738_v26 = vpop.f32.mrb[81].mxu1  ;;  %v2027_v45 = vadd.f32 %v6133_v2, %v4780_v20  ;;  %v2747_v50 = vadd.f32 %v6133_v2, %v4960_v21 }
 0x17f   :  { %v2019_v29 = vadd.f32 %v6133_v2, %v2018_v24  ;;  %v2739_v31 = vadd.f32 %v6133_v2, %v2738_v26  ;;  %v4781_v32 = vpop.f32.mrb[82].mxu0  ;;  %v4961_v33 = vpop.f32.mrb[82].mxu1  ;;  %v3594_v39 = vadd.f32 %v3593_v23, %v3235_v22  ;;  %v3384_v43 = vadd.f32 %v3383_v28, %v3055_v17 }
 0x180   :  { %v2021_v40 = vpop.f32.mrb[83].mxu0  ;;  %v2741_v41 = vpop.f32.mrb[83].mxu1  ;;  %v2030_v52 = vadd.f32 %v6133_v2, %v4781_v32  ;;  %v2750_v59 = vadd.f32 %v6133_v2, %v4961_v33  ;;  %v3059_v61 = vmax.f32 %v2027_v45, 0.0  ;;  %v3239_v3 = vmax.f32 %v2747_v50, 0.0 }
 0x181   :  { %v3057_v46 = vmax.f32 %v2019_v29, 0.0  ;;  %v3237_v47 = vmax.f32 %v2739_v31, 0.0  ;;  %v3595_v51 = vadd.f32 %v3594_v39, %v3236_v34  ;;  %v2022_v48 = vadd.f32 %v6133_v2, %v2021_v40 }
 0x182   :  { %v3385_v53 = vadd.f32 %v3384_v43, %v3056_v27  ;;  %v2742_v54 = vadd.f32 %v6133_v2, %v2741_v41  ;;  %v3060_v5 = vmax.f32 %v2030_v52, 0.0  ;;  %v3240_v16 = vmax.f32 %v2750_v59, 0.0 }
 0x183   :  { %v3596_v56 = vadd.f32 %v3595_v51, %v3237_v47  ;;  %v3058_v0 = vmax.f32 %v2022_v48, 0.0 }
 0x184   :  { %v3386_v63 = vadd.f32 %v3385_v53, %v3057_v46  ;;  %v3238_v36 = vmax.f32 %v2742_v54, 0.0 }
 0x185   :  { %v4784_v42 = vpop.f32.mrb[84].mxu0  ;;  %v4964_v1 = vpop.f32.mrb[84].mxu1 }
 0x186   :  { %v2034_v6 = vpop.f32.mrb[85].mxu0  ;;  %v2754_v57 = vpop.f32.mrb[85].mxu1  ;;  %v3387_v7 = vadd.f32 %v3386_v63, %v3058_v0  ;;  %v3597_v9 = vadd.f32 %v3596_v56, %v3238_v36  ;;  %v2043_v17 = vadd.f32 %v6133_v2, %v4784_v42  ;;  %v2763_v26 = vadd.f32 %v6133_v2, %v4964_v1 }
 0x187   :  { %v2035_v10 = vadd.f32 %v6133_v2, %v2034_v6  ;;  %v2755_v12 = vadd.f32 %v6133_v2, %v2754_v57  ;;  %v4785_v13 = vpop.f32.mrb[86].mxu0  ;;  %v4965_v14 = vpop.f32.mrb[86].mxu1 }
 0x188   :  { %v2037_v18 = vpop.f32.mrb[87].mxu0  ;;  %v2757_v20 = vpop.f32.mrb[87].mxu1  ;;  %v3388_v21 = vadd.f32 %v3387_v7, %v3059_v61  ;;  %v3598_v22 = vadd.f32 %v3597_v9, %v3239_v3  ;;  %v2046_v27 = vadd.f32 %v6133_v2, %v4785_v13  ;;  %v2766_v33 = vadd.f32 %v6133_v2, %v4965_v14 }
 0x189   :  { %v3061_v23 = vmax.f32 %v2035_v10, 0.0  ;;  %v3241_v24 = vmax.f32 %v2755_v12, 0.0  ;;  %v2038_v28 = vadd.f32 %v6133_v2, %v2037_v18  ;;  %v2758_v29 = vadd.f32 %v6133_v2, %v2757_v20 }
 0x18a   :  { %v3389_v31 = vadd.f32 %v3388_v21, %v3060_v5  ;;  %v3599_v32 = vadd.f32 %v3598_v22, %v3240_v16  ;;  %v3063_v40 = vmax.f32 %v2043_v17, 0.0  ;;  %v3243_v47 = vmax.f32 %v2763_v26, 0.0 }
 0x18b   :  { %v3062_v34 = vmax.f32 %v2038_v28, 0.0  ;;  %v3242_v39 = vmax.f32 %v2758_v29, 0.0  ;;  %v3064_v50 = vmax.f32 %v2046_v27, 0.0  ;;  %v3244_v61 = vmax.f32 %v2766_v33, 0.0 }
 0x18c   :  { %v3390_v41 = vadd.f32 %v3389_v31, %v3061_v23  ;;  %v3600_v43 = vadd.f32 %v3599_v32, %v3241_v24 }
 0x18d   :  { %v4788_v45 = vpop.f32.mrb[88].mxu0  ;;  %v4968_v46 = vpop.f32.mrb[88].mxu1 }
 0x18e   :  { %v2050_v51 = vpop.f32.mrb[89].mxu0  ;;  %v2770_v52 = vpop.f32.mrb[89].mxu1  ;;  %v3391_v48 = vadd.f32 %v3390_v41, %v3062_v34  ;;  %v3601_v53 = vadd.f32 %v3600_v43, %v3242_v39  ;;  %v2059_v63 = vadd.f32 %v6133_v2, %v4788_v45  ;;  %v2779_v57 = vadd.f32 %v6133_v2, %v4968_v46 }
 0x18f   :  { %v2051_v54 = vadd.f32 %v6133_v2, %v2050_v51  ;;  %v2771_v56 = vadd.f32 %v6133_v2, %v2770_v52  ;;  %v4789_v59 = vpop.f32.mrb[90].mxu0  ;;  %v4969_v0 = vpop.f32.mrb[90].mxu1 }
 0x190   :  { %v2053_v36 = vpop.f32.mrb[91].mxu0  ;;  %v2773_v42 = vpop.f32.mrb[91].mxu1  ;;  %v3392_v1 = vadd.f32 %v3391_v48, %v3063_v40  ;;  %v3602_v3 = vadd.f32 %v3601_v53, %v3243_v47  ;;  %v2062_v7 = vadd.f32 %v6133_v2, %v4789_v59  ;;  %v2782_v14 = vadd.f32 %v6133_v2, %v4969_v0 }
 0x191   :  { %v3065_v5 = vmax.f32 %v2051_v54, 0.0  ;;  %v3245_v6 = vmax.f32 %v2771_v56, 0.0  ;;  %v2054_v9 = vadd.f32 %v6133_v2, %v2053_v36  ;;  %v2774_v10 = vadd.f32 %v6133_v2, %v2773_v42 }
 0x192   :  { %v3393_v12 = vadd.f32 %v3392_v1, %v3064_v50  ;;  %v3603_v13 = vadd.f32 %v3602_v3, %v3244_v61  ;;  %v3067_v18 = vmax.f32 %v2059_v63, 0.0  ;;  %v3247_v24 = vmax.f32 %v2779_v57, 0.0 }
 0x193   :  { %v3066_v16 = vmax.f32 %v2054_v9, 0.0  ;;  %v3246_v17 = vmax.f32 %v2774_v10, 0.0  ;;  %v3068_v26 = vmax.f32 %v2062_v7, 0.0  ;;  %v3248_v40 = vmax.f32 %v2782_v14, 0.0 }
 0x194   :  { %v3394_v20 = vadd.f32 %v3393_v12, %v3065_v5  ;;  %v3604_v21 = vadd.f32 %v3603_v13, %v3245_v6 }
 0x195   :  { %v4792_v22 = vpop.f32.mrb[92].mxu0  ;;  %v4972_v23 = vpop.f32.mrb[92].mxu1 }
 0x196   :  { %v2066_v27 = vpop.f32.mrb[93].mxu0  ;;  %v2786_v28 = vpop.f32.mrb[93].mxu1  ;;  %v3395_v29 = vadd.f32 %v3394_v20, %v3066_v16  ;;  %v3605_v31 = vadd.f32 %v3604_v21, %v3246_v17  ;;  %v2075_v41 = vadd.f32 %v6133_v2, %v4792_v22  ;;  %v2795_v52 = vadd.f32 %v6133_v2, %v4972_v23 }
 0x197   :  { %v2067_v32 = vadd.f32 %v6133_v2, %v2066_v27  ;;  %v2787_v33 = vadd.f32 %v6133_v2, %v2786_v28  ;;  %v4793_v34 = vpop.f32.mrb[94].mxu0  ;;  %v4973_v39 = vpop.f32.mrb[94].mxu1 }
 0x198   :  { %v2069_v43 = vpop.f32.mrb[95].mxu0  ;;  %v2789_v45 = vpop.f32.mrb[95].mxu1  ;;  %v3396_v46 = vadd.f32 %v3395_v29, %v3067_v18  ;;  %v3606_v47 = vadd.f32 %v3605_v31, %v3247_v24  ;;  %v2078_v48 = vadd.f32 %v6133_v2, %v4793_v34  ;;  %v2798_v0 = vadd.f32 %v6133_v2, %v4973_v39 }
 0x199   :  { %v3069_v50 = vmax.f32 %v2067_v32, 0.0  ;;  %v3249_v51 = vmax.f32 %v2787_v33, 0.0  ;;  %v2070_v53 = vadd.f32 %v6133_v2, %v2069_v43  ;;  %v2790_v54 = vadd.f32 %v6133_v2, %v2789_v45 }
 0x19a   :  { %v3397_v56 = vadd.f32 %v3396_v46, %v3068_v26  ;;  %v3607_v59 = vadd.f32 %v3606_v47, %v3248_v40  ;;  %v3071_v36 = vmax.f32 %v2075_v41, 0.0  ;;  %v3251_v6 = vmax.f32 %v2795_v52, 0.0 }
 0x19b   :  { %v3070_v61 = vmax.f32 %v2070_v53, 0.0  ;;  %v3250_v63 = vmax.f32 %v2790_v54, 0.0  ;;  %v3072_v57 = vmax.f32 %v2078_v48, 0.0  ;;  %v3252_v18 = vmax.f32 %v2798_v0, 0.0 }
 0x19c   :  { %v3398_v42 = vadd.f32 %v3397_v56, %v3069_v50  ;;  %v3608_v1 = vadd.f32 %v3607_v59, %v3249_v51 }
 0x19d   :  { %v4796_v3 = vpop.f32.mrb[96].mxu0  ;;  %v4976_v5 = vpop.f32.mrb[96].mxu1 }
 0x19e   :  { %v2082_v7 = vpop.f32.mrb[97].mxu0  ;;  %v2802_v9 = vpop.f32.mrb[97].mxu1  ;;  %v3399_v10 = vadd.f32 %v3398_v42, %v3070_v61  ;;  %v3609_v12 = vadd.f32 %v3608_v1, %v3250_v63  ;;  %v2091_v20 = vadd.f32 %v6133_v2, %v4796_v3  ;;  %v2811_v26 = vadd.f32 %v6133_v2, %v4976_v5 }
 0x19f   :  { %v2083_v13 = vadd.f32 %v6133_v2, %v2082_v7  ;;  %v2803_v14 = vadd.f32 %v6133_v2, %v2802_v9  ;;  %v4797_v16 = vpop.f32.mrb[98].mxu0  ;;  %v4977_v17 = vpop.f32.mrb[98].mxu1 }
 0x1a0   :  { %v2085_v21 = vpop.f32.mrb[99].mxu0  ;;  %v2805_v22 = vpop.f32.mrb[99].mxu1  ;;  %v3400_v23 = vadd.f32 %v3399_v10, %v3071_v36  ;;  %v3610_v24 = vadd.f32 %v3609_v12, %v3251_v6  ;;  %v2094_v29 = vadd.f32 %v6133_v2, %v4797_v16  ;;  %v3075_v39 = vmax.f32 %v2091_v20, 0.0 }
 0x1a1   :  { %v3253_v27 = vmax.f32 %v2803_v14, 0.0  ;;  %v3073_v28 = vmax.f32 %v2083_v13, 0.0  ;;  %v2086_v31 = vadd.f32 %v6133_v2, %v2085_v21  ;;  %v2806_v32 = vadd.f32 %v6133_v2, %v2805_v22 }
 0x1a2   :  { %v3401_v33 = vadd.f32 %v3400_v23, %v3072_v57  ;;  %v3611_v34 = vadd.f32 %v3610_v24, %v3252_v18  ;;  %v2814_v40 = vadd.f32 %v6133_v2, %v4977_v17  ;;  %v3255_v51 = vmax.f32 %v2811_v26, 0.0 }
 0x1a3   :  { %v3074_v41 = vmax.f32 %v2086_v31, 0.0  ;;  %v3254_v43 = vmax.f32 %v2806_v32, 0.0  ;;  %v3076_v52 = vmax.f32 %v2094_v29, 0.0 }
 0x1a4   :  { %v3402_v45 = vrot.slane %v3401_v33, 4  ;;  %v3612_v46 = vadd.f32 %v3611_v34, %v3253_v27  ;;  %v3256_v42 = vmax.f32 %v2814_v40, 0.0 }
 0x1a5   :  { %v4800_v47 = vpop.f32.mrb[100].mxu0  ;;  %v4980_v50 = vpop.f32.mrb[100].mxu1  ;;  %v3408_v48 = vadd.f32 %v3074_v41, %v3073_v28 }
 0x1a6   :  { %v2098_v53 = vpop.f32.mrb[101].mxu0  ;;  %v2818_v54 = vpop.f32.mrb[101].mxu1  ;;  %v3403_v56 = vadd.f32 %v3402_v45, %v3401_v33  ;;  %v3613_v59 = vadd.f32 %v3612_v46, %v3254_v43  ;;  %v2107_v3 = vadd.f32 %v6133_v2, %v4800_v47  ;;  %v2827_v12 = vadd.f32 %v6133_v2, %v4980_v50 }
 0x1a7   :  { %v2099_v0 = vadd.f32 %v6133_v2, %v2098_v53  ;;  %v2819_v61 = vadd.f32 %v6133_v2, %v2818_v54  ;;  %v4801_v63 = vpop.f32.mrb[102].mxu0  ;;  %v4981_v36 = vpop.f32.mrb[102].mxu1  ;;  %v3409_v1 = vadd.f32 %v3408_v48, %v3075_v39 }
 0x1a8   :  { %v2101_v5 = vpop.f32.mrb[103].mxu0  ;;  %v2821_v6 = vpop.f32.mrb[103].mxu1  ;;  %v3404_v57 = vrot.slane %v3403_v56, 2  ;;  %v3614_v7 = vadd.f32 %v3613_v59, %v3255_v51  ;;  %v2110_v14 = vadd.f32 %v6133_v2, %v4801_v63  ;;  %v3079_v21 = vmax.f32 %v2107_v3, 0.0 }
 0x1a9   :  { %v3077_v9 = vmax.f32 %v2099_v0, 0.0  ;;  %v3257_v10 = vmax.f32 %v2819_v61, 0.0  ;;  %v3410_v13 = vadd.f32 %v3409_v1, %v3076_v52  ;;  %v2102_v16 = vadd.f32 %v6133_v2, %v2101_v5 }
 0x1aa   :  { %v3405_v17 = vadd.f32 %v3404_v57, %v3403_v56  ;;  %v3615_v18 = vadd.f32 %v3614_v7, %v3256_v42  ;;  %v2822_v20 = vadd.f32 %v6133_v2, %v2821_v6  ;;  %v2830_v23 = vadd.f32 %v6133_v2, %v4981_v36 }
 0x1ab   :  { %v3411_v22 = vadd.f32 %v3410_v13, %v3077_v9  ;;  %v3078_v24 = vmax.f32 %v2102_v16, 0.0  ;;  %v3259_v32 = vmax.f32 %v2827_v12, 0.0  ;;  %v3080_v33 = vmax.f32 %v2110_v14, 0.0 }
 0x1ac   :  { %v3406_v26 = vrot.slane %v3405_v17, 1  ;;  %v3616_v27 = vadd.f32 %v3615_v18, %v3257_v10  ;;  %v3258_v28 = vmax.f32 %v2822_v20, 0.0  ;;  %v3260_v51 = vmax.f32 %v2830_v23, 0.0 }
 0x1ad   :  { %v4804_v29 = vpop.f32.mrb[104].mxu0  ;;  %v4984_v31 = vpop.f32.mrb[104].mxu1  ;;  %v3412_v34 = vadd.f32 %v3411_v22, %v3078_v24 }
 0x1ae   :  { %v2114_v39 = vpop.f32.mrb[105].mxu0  ;;  %v2834_v40 = vpop.f32.mrb[105].mxu1  ;;  %v3407_v41 = vadd.f32 %v3406_v26, %v3405_v17  ;;  %v3617_v43 = vadd.f32 %v3616_v27, %v3258_v28  ;;  %v2123_v48 = vadd.f32 %v6133_v2, %v4804_v29  ;;  %v2843_v63 = vadd.f32 %v6133_v2, %v4984_v31 }
 0x1af   :  { %v2115_v45 = vadd.f32 %v6133_v2, %v2114_v39  ;;  %v2835_v46 = vadd.f32 %v6133_v2, %v2834_v40  ;;  %v4805_v47 = vpop.f32.mrb[106].mxu0  ;;  %v4985_v50 = vpop.f32.mrb[106].mxu1  ;;  %v3413_v52 = vadd.f32 %v3412_v34, %v3079_v21 }
 0x1b0   :  { %v2117_v53 = vpop.f32.mrb[107].mxu0  ;;  %v2837_v54 = vpop.f32.mrb[107].mxu1  ;;  %v3670_v56 = vmul.f32 0.00390625, %v3407_v41  ;;  %v3618_v59 = vadd.f32 %v3617_v43, %v3259_v32  ;;  %v2126_v42 = vadd.f32 %v6133_v2, %v4805_v47  ;;  %v3083_v57 = vmax.f32 %v2123_v48, 0.0 }
 0x1b1   :  { %v3081_v0 = vmax.f32 %v2115_v45, 0.0  ;;  %v3261_v61 = vmax.f32 %v2835_v46, 0.0  ;;  %v3414_v36 = vadd.f32 %v3413_v52, %v3080_v33  ;;  %v2118_v1 = vadd.f32 %v6133_v2, %v2117_v53 }
 0x1b2   :  { %v3619_v3 = vadd.f32 %v3618_v59, %v3260_v51  ;;  %v2838_v5 = vadd.f32 %v6133_v2, %v2837_v54  ;;  %v6315_v6 = vsel %vm3690_vm6, %v3670_v56, %v6234_v30  ;;  %v2846_v12 = vadd.f32 %v6133_v2, %v4985_v50 }
 0x1b3   :  { %v3415_v7 = vadd.f32 %v3414_v36, %v3081_v0  ;;  %v3082_v9 = vmax.f32 %v2118_v1, 0.0  ;;  %v3263_v17 = vmax.f32 %v2843_v63, 0.0  ;;  %v3084_v18 = vmax.f32 %v2126_v42, 0.0 }
 0x1b4   :  { %v3620_v10 = vadd.f32 %v3619_v3, %v3261_v61  ;;  %v3262_v13 = vmax.f32 %v2838_v5, 0.0  ;;  %v3264_v33 = vmax.f32 %v2846_v12, 0.0 }
 0x1b5   :  { %v4808_v14 = vpop.f32.mrb[108].mxu0  ;;  %v4988_v16 = vpop.f32.mrb[108].mxu1  ;;  %v3416_v20 = vadd.f32 %v3415_v7, %v3082_v9 }
 0x1b6   :  { %v2130_v21 = vpop.f32.mrb[109].mxu0  ;;  %v2850_v22 = vpop.f32.mrb[109].mxu1  ;;  %v3621_v23 = vadd.f32 %v3620_v10, %v3262_v13  ;;  %v2139_v24 = vadd.f32 %v6133_v2, %v4808_v14  ;;  %v2859_v39 = vadd.f32 %v6133_v2, %v4988_v16 }
 0x1b7   :  { %v2131_v30 = vadd.f32 %v6133_v2, %v2130_v21  ;;  %v2851_v26 = vadd.f32 %v6133_v2, %v2850_v22  ;;  %v4809_v27 = vpop.f32.mrb[110].mxu0  ;;  %v4989_v28 = vpop.f32.mrb[110].mxu1  ;;  %v3417_v29 = vadd.f32 %v3416_v20, %v3083_v57  ;;  %v6334_v22 = vld [vmem:[%s6546_s2] ss:$0 sm:$0xff] }
 0x1b8   :  { %v2133_v31 = vpop.f32.mrb[111].mxu0  ;;  %v2853_v32 = vpop.f32.mrb[111].mxu1  ;;  %v3622_v34 = vadd.f32 %v3621_v23, %v3263_v17  ;;  %v2142_v43 = vadd.f32 %v6133_v2, %v4809_v27  ;;  %v3087_v50 = vmax.f32 %v2139_v24, 0.0  ;;  %v2862_v48 = vadd.f32 %v6133_v2, %v4989_v28 }
 0x1b9   :  { %v3085_v40 = vmax.f32 %v2131_v30, 0.0  ;;  %v3418_v41 = vadd.f32 %v3417_v29, %v3084_v18  ;;  %v2134_v45 = vadd.f32 %v6133_v2, %v2133_v31  ;;  %v2854_v46 = vadd.f32 %v6133_v2, %v2853_v32 }
 0x1ba   :  { %v6325_v47 = vadd.f32 %v3622_v34, %v3264_v33  ;;  %v3265_v51 = vmax.f32 %v2851_v26, 0.0  ;;  %v3267_v0 = vmax.f32 %v2859_v39, 0.0  ;;  %v3088_v61 = vmax.f32 %v2142_v43, 0.0 }
 0x1bb   :  { %v3419_v52 = vadd.f32 %v3418_v41, %v3085_v40  ;;  %v3086_v53 = vmax.f32 %v2134_v45, 0.0  ;;  %v3266_v54 = vmax.f32 %v2854_v46, 0.0  ;;  %v3268_v10 = vmax.f32 %v2862_v48, 0.0 }
 0x1bd   :  { %v4812_v56 = vpop.f32.mrb[112].mxu0  ;;  %v4992_v59 = vpop.f32.mrb[112].mxu1  ;;  %v3420_v63 = vadd.f32 %v3419_v52, %v3086_v53  ;;  %v3630_v36 = vadd.f32 %v3266_v54, %v3265_v51 }
 0x1be   :  { %v2146_v42 = vpop.f32.mrb[113].mxu0  ;;  %v2866_v1 = vpop.f32.mrb[113].mxu1  ;;  %v2155_v3 = vadd.f32 %v6133_v2, %v4812_v56  ;;  %v2875_v30 = vadd.f32 %v6334_v22, %v4992_v59 }
 0x1bf   :  { %v2147_v5 = vadd.f32 %v6133_v2, %v2146_v42  ;;  %v2867_v57 = vadd.f32 %v6133_v2, %v2866_v1  ;;  %v4813_v7 = vpop.f32.mrb[114].mxu0  ;;  %v4993_v9 = vpop.f32.mrb[114].mxu1  ;;  %v3421_v12 = vadd.f32 %v3420_v63, %v3087_v50  ;;  %v3631_v13 = vadd.f32 %v3630_v36, %v3267_v0 }
 0x1c0   :  { %v2149_v14 = vpop.f32.mrb[115].mxu0  ;;  %v2869_v16 = vpop.f32.mrb[115].mxu1  ;;  %v2158_v23 = vadd.f32 %v6334_v22, %v4813_v7  ;;  %v3091_v24 = vmax.f32 %v2155_v3, 0.0  ;;  %v2878_v29 = vadd.f32 %v6334_v22, %v4993_v9  ;;  %v3271_v45 = vmax.f32 %v2875_v30, 0.0 }
 0x1c1   :  { %v3089_v17 = vmax.f32 %v2147_v5, 0.0  ;;  %v3269_v18 = vmax.f32 %v2867_v57, 0.0  ;;  %v3422_v20 = vadd.f32 %v3421_v12, %v3088_v61  ;;  %v3632_v21 = vadd.f32 %v3631_v13, %v3268_v10 }
 0x1c2   :  { %v2150_v2 = vadd.f32 %v6334_v22, %v2149_v14  ;;  %v2870_v26 = vadd.f32 %v6334_v22, %v2869_v16  ;;  %v3092_v39 = vmax.f32 %v2158_v23, 0.0  ;;  %v3272_v53 = vmax.f32 %v2878_v29, 0.0 }
 0x1c3   :  { %v3423_v27 = vadd.f32 %v3422_v20, %v3089_v17  ;;  %v3633_v28 = vadd.f32 %v3632_v21, %v3269_v18 }
 0x1c4   :  { %v3090_v31 = vmax.f32 %v2150_v2, 0.0  ;;  %v3270_v32 = vmax.f32 %v2870_v26, 0.0 }
 0x1c5   :  { %v4816_v33 = vpop.f32.mrb[116].mxu0  ;;  %v4996_v34 = vpop.f32.mrb[116].mxu1 }
 0x1c6   :  { %v3424_v40 = vadd.f32 %v3423_v27, %v3090_v31  ;;  %v2162_v41 = vpop.f32.mrb[117].mxu0  ;;  %v2882_v43 = vpop.f32.mrb[117].mxu1  ;;  %v3634_v46 = vadd.f32 %v3633_v28, %v3270_v32  ;;  %v2171_v56 = vadd.f32 %v6334_v22, %v4816_v33  ;;  %v2891_v63 = vadd.f32 %v6334_v22, %v4996_v34 }
 0x1c7   :  { %v2163_v50 = vadd.f32 %v6334_v22, %v2162_v41  ;;  %v2883_v51 = vadd.f32 %v6334_v22, %v2882_v43  ;;  %v4817_v52 = vpop.f32.mrb[118].mxu0  ;;  %v4997_v48 = vpop.f32.mrb[118].mxu1 }
 0x1c8   :  { %v3425_v54 = vadd.f32 %v3424_v40, %v3091_v24  ;;  %v2165_v59 = vpop.f32.mrb[119].mxu0  ;;  %v2885_v0 = vpop.f32.mrb[119].mxu1  ;;  %v3635_v61 = vadd.f32 %v3634_v46, %v3271_v45  ;;  %v2174_v3 = vadd.f32 %v6334_v22, %v4817_v52  ;;  %v3095_v9 = vmax.f32 %v2171_v56, 0.0 }
 0x1c9   :  { %v3093_v36 = vmax.f32 %v2163_v50, 0.0  ;;  %v3273_v42 = vmax.f32 %v2883_v51, 0.0  ;;  %v2166_v5 = vadd.f32 %v6334_v22, %v2165_v59  ;;  %v2886_v57 = vadd.f32 %v6334_v22, %v2885_v0 }
 0x1ca   :  { %v3426_v1 = vadd.f32 %v3425_v54, %v3092_v39  ;;  %v3636_v7 = vadd.f32 %v3635_v61, %v3272_v53  ;;  %v2894_v16 = vadd.f32 %v6334_v22, %v4997_v48  ;;  %v3275_v20 = vmax.f32 %v2891_v63, 0.0 }
 0x1cb   :  { %v3094_v12 = vmax.f32 %v2166_v5, 0.0  ;;  %v3274_v13 = vmax.f32 %v2886_v57, 0.0  ;;  %v3096_v21 = vmax.f32 %v2174_v3, 0.0 }
 0x1cc   :  { %v3427_v10 = vadd.f32 %v3426_v1, %v3093_v36  ;;  %v3637_v14 = vadd.f32 %v3636_v7, %v3273_v42  ;;  %v3276_v39 = vmax.f32 %v2894_v16, 0.0 }
 0x1cd   :  { %v4820_v17 = vpop.f32.mrb[120].mxu0  ;;  %v5000_v18 = vpop.f32.mrb[120].mxu1 }
 0x1ce   :  { %v3428_v23 = vadd.f32 %v3427_v10, %v3094_v12  ;;  %v2178_v2 = vpop.f32.mrb[121].mxu0  ;;  %v2898_v24 = vpop.f32.mrb[121].mxu1  ;;  %v3638_v30 = vadd.f32 %v3637_v14, %v3274_v13  ;;  %v2187_v26 = vadd.f32 %v6334_v22, %v4820_v17  ;;  %v2907_v48 = vadd.f32 %v6334_v22, %v5000_v18 }
 0x1cf   :  { %v2179_v27 = vadd.f32 %v6334_v22, %v2178_v2  ;;  %v2899_v28 = vadd.f32 %v6334_v22, %v2898_v24  ;;  %v4821_v29 = vpop.f32.mrb[122].mxu0  ;;  %v5001_v31 = vpop.f32.mrb[122].mxu1 }
 0x1d0   :  { %v3429_v32 = vadd.f32 %v3428_v23, %v3095_v9  ;;  %v2181_v33 = vpop.f32.mrb[123].mxu0  ;;  %v2901_v34 = vpop.f32.mrb[123].mxu1  ;;  %v3639_v40 = vadd.f32 %v3638_v30, %v3275_v20  ;;  %v2190_v46 = vadd.f32 %v6334_v22, %v4821_v29  ;;  %v3099_v52 = vmax.f32 %v2187_v26, 0.0 }
 0x1d1   :  { %v3097_v41 = vmax.f32 %v2179_v27, 0.0  ;;  %v3277_v43 = vmax.f32 %v2899_v28, 0.0  ;;  %v2182_v50 = vadd.f32 %v6334_v22, %v2181_v33  ;;  %v2902_v51 = vadd.f32 %v6334_v22, %v2901_v34 }
 0x1d2   :  { %v3430_v45 = vadd.f32 %v3429_v32, %v3096_v21  ;;  %v3640_v53 = vadd.f32 %v3639_v40, %v3276_v39  ;;  %v2910_v56 = vadd.f32 %v6334_v22, %v5001_v31  ;;  %v3100_v42 = vmax.f32 %v2190_v46, 0.0 }
 0x1d3   :  { %v3098_v59 = vmax.f32 %v2182_v50, 0.0  ;;  %v3278_v0 = vmax.f32 %v2902_v51, 0.0  ;;  %v3279_v57 = vmax.f32 %v2907_v48, 0.0  ;;  %v3714_v31 = vlaneseq }
 0x1d4   :  { %v3431_v54 = vadd.f32 %v3430_v45, %v3097_v41  ;;  %v3641_v61 = vadd.f32 %v3640_v53, %v3277_v43  ;;  %v3280_v14 = vmax.f32 %v2910_v56, 0.0 }
 0x1d5   :  { %v4824_v63 = vpop.f32.mrb[124].mxu0  ;;  %v5004_v36 = vpop.f32.mrb[124].mxu1 }
 0x1d6   :  { %v3432_v1 = vadd.f32 %v3431_v54, %v3098_v59  ;;  %v2194_v3 = vpop.f32.mrb[125].mxu0  ;;  %v2914_v5 = vpop.f32.mrb[125].mxu1  ;;  %v3642_v7 = vadd.f32 %v3641_v61, %v3278_v0  ;;  %v2203_v17 = vadd.f32 %v6334_v22, %v4824_v63  ;;  %v2923_v23 = vadd.f32 %v6334_v22, %v5004_v36 }
 0x1d7   :  { %v2195_v9 = vadd.f32 %v6334_v22, %v2194_v3  ;;  %v2915_v10 = vadd.f32 %v6334_v22, %v2914_v5  ;;  %v4825_v12 = vpop.f32.mrb[126].mxu0  ;;  %v5005_v13 = vpop.f32.mrb[126].mxu1 }
 0x1d8   :  { %v3433_v16 = vadd.f32 %v3432_v1, %v3099_v52  ;;  %v2197_v18 = vpop.f32.mrb[127].mxu0  ;;  %v2917_v20 = vpop.f32.mrb[127].mxu1  ;;  %v3643_v21 = vadd.f32 %v3642_v7, %v3279_v57  ;;  %v2206_v26 = vadd.f32 %v6334_v22, %v4825_v12  ;;  %v3103_v32 = vmax.f32 %v2203_v17, 0.0 }
 0x1d9   :  { %v3101_v2 = vmax.f32 %v2195_v9, 0.0  ;;  %v3281_v24 = vmax.f32 %v2915_v10, 0.0  ;;  %v2198_v27 = vadd.f32 %v6334_v22, %v2197_v18  ;;  %v2918_v28 = vadd.f32 %v6334_v22, %v2917_v20 }
 0x1da   :  { %v3434_v30 = vadd.f32 %v3433_v16, %v3100_v42  ;;  %v3644_v29 = vadd.f32 %v3643_v21, %v3280_v14  ;;  %v2926_v41 = vadd.f32 %v6334_v22, %v5005_v13  ;;  %v3283_v46 = vmax.f32 %v2923_v23, 0.0 }
 0x1db   :  { %v3102_v34 = vmax.f32 %v2198_v27, 0.0  ;;  %v3282_v39 = vmax.f32 %v2918_v28, 0.0  ;;  %v3104_v50 = vmax.f32 %v2206_v26, 0.0  ;;  %v6368_v1 = vshrl.u32 %v3714_v31, 7 }
 0x1dc   :  { %v3435_v33 = vadd.f32 %v3434_v30, %v3101_v2  ;;  %v3645_v40 = vadd.f32 %v3644_v29, %v3281_v24  ;;  %v3284_v3 = vmax.f32 %v2926_v41, 0.0 }
 0x1dd   :  { %v4828_v43 = vpop.f32.mrb[128].mxu0  ;;  %v5008_v45 = vpop.f32.mrb[128].mxu1 }
 0x1de   :  { %v3436_v51 = vadd.f32 %v3435_v33, %v3102_v34  ;;  %v2210_v52 = vpop.f32.mrb[129].mxu0  ;;  %v2930_v48 = vpop.f32.mrb[129].mxu1  ;;  %v3646_v53 = vadd.f32 %v3645_v40, %v3282_v39  ;;  %v2219_v54 = vadd.f32 %v6334_v22, %v4828_v43  ;;  %v2939_v16 = vadd.f32 %v6334_v22, %v5008_v45 }
 0x1df   :  { %v2211_v56 = vadd.f32 %v6334_v22, %v2210_v52  ;;  %v2931_v59 = vadd.f32 %v6334_v22, %v2930_v48  ;;  %v4829_v0 = vpop.f32.mrb[130].mxu0  ;;  %v5009_v61 = vpop.f32.mrb[130].mxu1 }
 0x1e0   :  { %v3437_v63 = vadd.f32 %v3436_v51, %v3103_v32  ;;  %v2213_v36 = vpop.f32.mrb[131].mxu0  ;;  %v2933_v42 = vpop.f32.mrb[131].mxu1  ;;  %v3647_v5 = vadd.f32 %v3646_v53, %v3283_v46  ;;  %v2222_v7 = vadd.f32 %v6334_v22, %v4829_v0  ;;  %v3107_v14 = vmax.f32 %v2219_v54, 0.0 }
 0x1e1   :  { %v3285_v57 = vmax.f32 %v2931_v59, 0.0  ;;  %v3105_v10 = vmax.f32 %v2211_v56, 0.0  ;;  %v2214_v12 = vadd.f32 %v6334_v22, %v2213_v36  ;;  %v2934_v13 = vadd.f32 %v6334_v22, %v2933_v42  ;;  %v6385_v42 = vld [vmem:[%s6549_s5] sm:$0x7] }
 0x1e2   :  { %v3438_v9 = vadd.f32 %v3437_v63, %v3104_v50  ;;  %v3648_v17 = vadd.f32 %v3647_v5, %v3284_v3  ;;  %v2942_v20 = vadd.f32 %v6334_v22, %v5009_v61  ;;  %v3108_v27 = vmax.f32 %v2222_v7, 0.0 }
 0x1e3   :  { %v3106_v21 = vmax.f32 %v2214_v12, 0.0  ;;  %v3286_v23 = vmax.f32 %v2934_v13, 0.0  ;;  %v3716_v32 = vsub.s32 0, %v6368_v1  ;;  %v3287_v33 = vmax.f32 %v2939_v16, 0.0 }
 0x1e4   :  { %v3439_v18 = vrot.slane %v3438_v9, 4  ;;  %v3649_v2 = vadd.f32 %v3648_v17, %v3285_v57  ;;  %v3288_v46 = vmax.f32 %v2942_v20, 0.0  ;;  %v3624_v3 = vrot.slane %v6325_v47, 4 }
 0x1e5   :  { %v4832_v24 = vpop.f32.mrb[132].mxu0  ;;  %v5012_v30 = vpop.f32.mrb[132].mxu1  ;;  %v3445_v28 = vadd.f32 %v3106_v21, %v3105_v10  ;;  %v3720_v7 = vsub.s32 1, %v6368_v1  ;;  %v3717_v21 = vrot.slane %v6385_v42, %v3716_v32 }
 0x1e6   :  { %v3440_v26 = vadd.f32 %v3439_v18, %v3438_v9  ;;  %v2226_v29 = vpop.f32.mrb[133].mxu0  ;;  %v2946_v31 = vpop.f32.mrb[133].mxu1  ;;  %v3650_v34 = vadd.f32 %v3649_v2, %v3286_v23  ;;  %v2235_v51 = vadd.f32 %v6334_v22, %v4832_v24  ;;  %v2955_v54 = vadd.f32 %v6334_v22, %v5012_v30 }
 0x1e7   :  { %v2227_v39 = vadd.f32 %v6334_v22, %v2226_v29  ;;  %v2947_v40 = vadd.f32 %v6334_v22, %v2946_v31  ;;  %v4833_v41 = vpop.f32.mrb[134].mxu0  ;;  %v5013_v43 = vpop.f32.mrb[134].mxu1  ;;  %v3446_v50 = vadd.f32 %v3445_v28, %v3107_v14 }
 0x1e8   :  { %v3441_v45 = vrot.slane %v3440_v26, 2  ;;  %v2229_v52 = vpop.f32.mrb[135].mxu0  ;;  %v2949_v48 = vpop.f32.mrb[135].mxu1  ;;  %v3651_v53 = vadd.f32 %v3650_v34, %v3287_v33  ;;  %v2238_v63 = vadd.f32 %v6334_v22, %v4833_v41  ;;  %v3111_v10 = vmax.f32 %v2235_v51, 0.0 }
 0x1e9   :  { %v3109_v56 = vmax.f32 %v2227_v39, 0.0  ;;  %v3289_v59 = vmax.f32 %v2947_v40, 0.0  ;;  %v3447_v61 = vadd.f32 %v3446_v50, %v3108_v27  ;;  %v2230_v36 = vadd.f32 %v6334_v22, %v2229_v52 }
 0x1ea   :  { %v3442_v0 = vadd.f32 %v3441_v45, %v3440_v26  ;;  %v3652_v5 = vadd.f32 %v3651_v53, %v3288_v46  ;;  %v2950_v57 = vadd.f32 %v6334_v22, %v2949_v48  ;;  %v2958_v16 = vadd.f32 %v6334_v22, %v5013_v43 }
 0x1eb   :  { %v3448_v12 = vadd.f32 %v3447_v61, %v3109_v56  ;;  %v3110_v13 = vmax.f32 %v2230_v36, 0.0  ;;  %v3291_v2 = vmax.f32 %v2955_v54, 0.0  ;;  %v3112_v24 = vmax.f32 %v2238_v63, 0.0 }
 0x1ec   :  { %v3443_v9 = vrot.slane %v3442_v0, 1  ;;  %v3653_v14 = vadd.f32 %v3652_v5, %v3289_v59  ;;  %v3290_v17 = vmax.f32 %v2950_v57, 0.0  ;;  %v3625_v40 = vadd.f32 %v3624_v3, %v6325_v47 }
 0x1ed   :  { %v4836_v18 = vpop.f32.mrb[136].mxu0  ;;  %v5016_v20 = vpop.f32.mrb[136].mxu1  ;;  %v3449_v30 = vadd.f32 %v3448_v12, %v3110_v13  ;;  %v3721_v46 = vrot.slane %v6385_v42, %v3720_v7  ;;  %v3292_v50 = vmax.f32 %v2958_v16, 0.0 }
 0x1ee   :  { %v3444_v23 = vadd.f32 %v3443_v9, %v3442_v0  ;;  %v2242_v26 = vpop.f32.mrb[137].mxu0  ;;  %v2962_v27 = vpop.f32.mrb[137].mxu1  ;;  %v3654_v28 = vadd.f32 %v3653_v14, %v3290_v17  ;;  %v2251_v29 = vadd.f32 %v6334_v22, %v4836_v18  ;;  %v2971_v47 = vadd.f32 %v6334_v22, %v5016_v20 }
 0x1ef   :  { %v2243_v31 = vadd.f32 %v6334_v22, %v2242_v26  ;;  %v2963_v33 = vadd.f32 %v6334_v22, %v2962_v27  ;;  %v4837_v34 = vpop.f32.mrb[138].mxu0  ;;  %v5017_v39 = vpop.f32.mrb[138].mxu1  ;;  %v3450_v43 = vadd.f32 %v3449_v30, %v3111_v10  ;;  %v3626_v12 = vrot.slane %v3625_v40, 2 }
 0x1f0   :  { %v3671_v41 = vmul.f32 0.00390625, %v3444_v23  ;;  %v2245_v32 = vpop.f32.mrb[139].mxu0  ;;  %v2965_v45 = vpop.f32.mrb[139].mxu1  ;;  %v3655_v51 = vadd.f32 %v3654_v28, %v3291_v2  ;;  %v2254_v54 = vadd.f32 %v6334_v22, %v4837_v34  ;;  %v3115_v0 = vmax.f32 %v2251_v29, 0.0 }
 0x1f1   :  { %v3113_v52 = vmax.f32 %v2243_v31, 0.0  ;;  %v3293_v48 = vmax.f32 %v2963_v33, 0.0  ;;  %v3451_v53 = vadd.f32 %v3450_v43, %v3112_v24  ;;  %v2246_v56 = vadd.f32 %v6334_v22, %v2245_v32 }
 0x1f2   :  { %v2966_v59 = vadd.f32 %v6334_v22, %v2965_v45  ;;  %v3656_v61 = vadd.f32 %v3655_v51, %v3292_v50  ;;  %v6403_v63 = vsel %vm3692_vm7, %v3671_v41, %v6315_v6  ;;  %v2974_v3 = vadd.f32 %v6334_v22, %v5017_v39  ;;  %v5238_v51 = vld [vmem:[%s6550_s6 + $0x80] sm:$0xff]  }
 0x1f3   :  { %v3452_v36 = vadd.f32 %v3451_v53, %v3113_v52  ;;  %v3114_v5 = vmax.f32 %v2246_v56, 0.0  ;;  %v3116_v13 = vmax.f32 %v2254_v54, 0.0  ;;  %v3295_v20 = vmax.f32 %v2971_v47, 0.0 }
 0x1f4   :  { %v3294_v57 = vmax.f32 %v2966_v59, 0.0  ;;  %v3657_v7 = vadd.f32 %v3656_v61, %v3293_v48  ;;  %v3296_v26 = vmax.f32 %v2974_v3, 0.0  ;;  %v3627_v54 = vadd.f32 %v3626_v12, %v3625_v40 }
 0x1f5   :  { %v4840_v9 = vpop.f32.mrb[140].mxu0  ;;  %v3783_v10 = vpop.f32.mrb[140].mxu1  ;;  %v3453_v14 = vadd.f32 %v3452_v36, %v3114_v5 }
 0x1f6   :  { %v3784_v16 = vadd.f32 %v3783_v10, %v3717_v21  ;;  %v2258_v17 = vpop.f32.mrb[141].mxu0  ;;  %v3785_v18 = vpop.f32.mrb[141].mxu1  ;;  %v3658_v23 = vadd.f32 %v3657_v7, %v3294_v57  ;;  %v2267_v28 = vadd.f32 %v6334_v22, %v4840_v9  ;;  %v5239_v9 = vld [vmem:[%s6550_s6 + $0x88] sm:$0xff]  }
 0x1f7   :  { %v2259_v2 = vadd.f32 %v6334_v22, %v2258_v17  ;;  %v3786_v6 = vadd.f32 %v3785_v18, %v3721_v46  ;;  %v4841_v24 = vpop.f32.mrb[142].mxu0  ;;  %v3787_v30 = vpop.f32.mrb[142].mxu1  ;;  %v3454_v27 = vadd.f32 %v3453_v14, %v3115_v0 }
 0x1f8   :  { %v3830_v29 = vmax.f32 %v3784_v16, 0.0  ;;  %v2261_v31 = vpop.f32.mrb[143].mxu0  ;;  %v3788_v33 = vpop.f32.mrb[143].mxu1  ;;  %v3659_v34 = vadd.f32 %v3658_v23, %v3295_v20  ;;  %v2270_v32 = vadd.f32 %v6334_v22, %v4841_v24  ;;  %v3119_v52 = vmax.f32 %v2267_v28, 0.0  ;;  %v5240_v30 = vld [vmem:[%s6550_s6 + $0x90] sm:$0xff]  }
 0x1f9   :  { %v3117_v39 = vmax.f32 %v2259_v2, 0.0  ;;  %v3831_v41 = vmax.f32 %v3786_v6, 0.0  ;;  %v2262_v21 = vadd.f32 %v6334_v22, %v2261_v31  ;;  %v3455_v43 = vadd.f32 %v3454_v27, %v3116_v13 }
 0x1fa   :  { %v3660_v45 = vadd.f32 %v3659_v34, %v3296_v26  ;;  %v3833_v48 = vpack.c.bf16 %v3830_v29, %v3830_v29  ;;  %v3120_v47 = vmax.f32 %v2270_v32, 0.0  ;;  %v3628_v20 = vrot.slane %v3627_v54, 1 }
 0x1fb   :  { %v3834_v50 = vpack.c.bf16 %v3831_v41, %v3831_v41  ;;  %v3118_v46 = vmax.f32 %v2262_v21, 0.0  ;;  %v3456_v53 = vadd.f32 %v3455_v43, %v3117_v39  ;;  %v5241_v43 = vld [vmem:[%s6550_s6 + $0x98] sm:$0xff]  }
 0x1fc   :  { %v3661_v56 = vrot.slane %v3660_v45, 4  ;;  %v3629_v29 = vadd.f32 %v3628_v20, %v3627_v54 }
 0x1fd   :  { %v4844_v59 = vpop.f32.mrb[144].mxu0  ;;  %4067 = vmatprep.mubr.bf16.mxu1 %v3834_v50  ;;  %v6413_v0 = vpop.f32.mrb[144].mxu1  ;;  %v3457_v61 = vadd.f32 %v3456_v53, %v3118_v46 }
 0x1fe   :  { %v2274_v36 = vpop.f32.mrb[145].mxu0  ;;  %4068 = vmatmul.mubr.bf16.vlgmr.msra.gmra.mrb[148].mxu1 %v3833_v48  ;;  %v5022_v3 = vpop.f32.mrb[145].mxu1  ;;  %v3662_v5 = vadd.f32 %v3661_v56, %v3660_v45  ;;  %v2283_v12 = vadd.f32 %v6334_v22, %v4844_v59  ;;  %v3676_v48 = vmul.f32 0.00390625, %v3629_v29  ;;  %v3724_v59 = vsub.s32 2, %v6368_v1 }
 0x1ff   :  { %v2275_v57 = vadd.f32 %v6334_v22, %v2274_v36  ;;  %5025 = vmatpush3.bf16.msra.mxu1 %v5238_v51  ;;  %v4845_v7 = vpop.f32.mrb[146].mxu0  ;;  %v3827_v40 = vpop.f32.mrb[146].mxu1  ;;  %5040 = vmatprep.mubr.msk.bf16.mxu1 %vm5299_vm4, %v5297_v38  ;;  %v3458_v10 = vadd.f32 %v3457_v61, %v3119_v52  ;;  %v5242_v61 = vld [vmem:[%s6550_s6 + $0xa0] sm:$0xff]  }
 0x200   :  { %v2277_v13 = vpop.f32.mrb[147].mxu0  ;;  %5026 = vmatprep.subr.bf16.mxu1 %v5297_v38  ;;  %v5023_v14 = vpop.f32.mrb[147].mxu1  ;;  %v3663_v16 = vrot.slane %v3662_v5, 2  ;;  %v2286_v2 = vadd.f32 %v6334_v22, %v4845_v7  ;;  %v3123_v26 = vmax.f32 %v2283_v12, 0.0 }
 0x201   :  { %v3121_v17 = vmax.f32 %v2275_v57, 0.0  ;;  %v2278_v18 = vadd.f32 %v6334_v22, %v2277_v13  ;;  %v3459_v23 = vadd.f32 %v3458_v10, %v3120_v47  ;;  %v3725_v10 = vrot.slane %v6385_v42, %v3724_v59  ;;  %v5243_v13 = vld [vmem:[%s6550_s6 + $0xa8] sm:$0xff]  }
 0x202   :  { %v3664_v6 = vadd.f32 %v3663_v16, %v3662_v5  ;;  %v3124_v33 = vmax.f32 %v2286_v2, 0.0 }
 0x203   :  { %v3122_v24 = vmax.f32 %v2278_v18, 0.0  ;;  %5027 = vmatpush3.bf16.msra.mxu1 %v5239_v9  ;;  %v3460_v27 = vadd.f32 %v3459_v23, %v3121_v17  ;;  %v3825_v2 = vadd.f32 %v6413_v0, %v3725_v10  ;;  %v5245_v0 = vld [vmem:[%s6550_s6 + $0xb8] sm:$0xff]  }
 0x204   :  { %5028 = vmatprep.subr.bf16.mxu1 %v5297_v38  ;;  %v3665_v31 = vrot.slane %v3664_v6, 1 }
 0x205   :  { %v4848_v28 = vpop.f32.mrb[148].mxu0  ;;  %v3461_v34 = vadd.f32 %v3460_v27, %v3122_v24  ;;  %v5244_v24 = vld [vmem:[%s6550_s6 + $0xb0] sm:$0xff]   ;;  %s5300_s6 = smov [#allocation2]  }
 0x206   :  { %v2290_v39 = vpop.f32.mrb[149].mxu0  ;;  %v3666_v32 = vadd.f32 %v3665_v31, %v3664_v6  ;;  %v2299_v50 = vadd.f32 %v6334_v22, %v4848_v28  ;;  %v3832_v31 = vmax.f32 %v3825_v2, 0.0  ;;  %s4121_s11 = sshll.u32 %s5300_s6, 4  ;;  %s4122_s11 = int_to_ptr.vmem [resolvable:$true] %s4121_s11 }
 0x207   :  { %v2291_v41 = vadd.f32 %v6334_v22, %v2290_v39  ;;  %5029 = vmatpush3.bf16.msra.mxu1 %v5240_v30  ;;  %v4849_v21 = vpop.f32.mrb[150].mxu0  ;;  %v3462_v45 = vadd.f32 %v3461_v34, %v3123_v26  ;;  %s5248_s12 = scalar_lea.vmem %s4122_s11, 256  ;;  %p5253_p1 = scmp.lt.s32.totalorder %s4122_s11, %s4122_s11 }
 0x208   :  { %v2293_v46 = vpop.f32.mrb[151].mxu0  ;;  %5030 = vmatprep.subr.bf16.mxu1 %v5297_v38  ;;  %v3677_v53 = vmul.f32 0.00390625, %v3666_v32  ;;  %v2302_v56 = vadd.f32 %v6334_v22, %v4849_v21  ;;  %v3127_v3 = vmax.f32 %v2299_v50, 0.0  ;;  %v3835_v50 = vpack.c.bf16 %v3832_v31, %v3832_v31  ;;  %p5249_p0 = scmp.ne.s32.totalorder %s4122_s11, %s5248_s12  ;;  %p5254_p2 = scmp.lt.s32.totalorder %s5248_s12, %s5248_s12 }
 0x209   :  { %v3125_v51 = vmax.f32 %v2291_v41, 0.0  ;;  %v2294_v52 = vadd.f32 %v6334_v22, %v2293_v46  ;;  %v3463_v54 = vadd.f32 %v3462_v45, %v3124_v33 }
 0x20a   :  { %v3702_v36 = vsel %vm3688_vm5, %v3677_v53, %v3676_v48  ;;  %v3128_v7 = vmax.f32 %v2302_v56, 0.0  ;;  %p5255_p3 = por %p5254_p2, %p5253_p1 }
 0x20b   :  { %v3126_v47 = vmax.f32 %v2294_v52, 0.0  ;;  %5031 = vmatpush3.bf16.msra.mxu1 %v5241_v43  ;;  %v3464_v5 = vadd.f32 %v3463_v54, %v3125_v51  ;;  %3706 = vst [vmem:[#allocation2 + $0x8] sm:$0x3] %v3702_v36 }
 0x20c   :  { %5032 = vmatprep.subr.bf16.mxu1 %v5297_v38  ;;  %p5256_p4 = pnand %p5255_p3, %p5249_p0 }
 0x20d   :  { %v4852_v57 = vpop.f32.mrb[152].mxu0  ;;  %v3465_v9 = vadd.f32 %v3464_v5, %v3126_v47 }
 0x20e   :  { %v2306_v40 = vpop.f32.mrb[153].mxu0  ;;  %v2315_v16 = vadd.f32 %v6334_v22, %v4852_v57 }
 0x20f   :  { %v2307_v1 = vadd.f32 %v6334_v22, %v2306_v40  ;;  %5033 = vmatpush3.bf16.msra.mxu1 %v5242_v61  ;;  %v4853_v12 = vpop.f32.mrb[154].mxu0  ;;  %v3466_v14 = vadd.f32 %v3465_v9, %v3127_v3 }
 0x210   :  { %v2309_v17 = vpop.f32.mrb[155].mxu0  ;;  %5034 = vmatprep.subr.bf16.mxu1 %v5297_v38  ;;  %v2318_v42 = vadd.f32 %v6334_v22, %v4853_v12  ;;  %v3131_v30 = vmax.f32 %v2315_v16, 0.0 }
 0x211   :  { %v3129_v18 = vmax.f32 %v2307_v1, 0.0  ;;  %v2310_v20 = vadd.f32 %v6334_v22, %v2309_v17  ;;  %v3467_v23 = vadd.f32 %v3466_v14, %v3128_v7 }
 0x212   :  { %v3132_v28 = vmax.f32 %v2318_v42, 0.0 }
 0x213   :  { %v3130_v6 = vmax.f32 %v2310_v20, 0.0  ;;  %5035 = vmatpush3.bf16.msra.mxu1 %v5243_v13  ;;  %v3468_v26 = vadd.f32 %v3467_v23, %v3129_v18 }
 0x214   :  { %5036 = vmatprep.subr.bf16.mxu1 %v5297_v38 }
 0x215   :  { %v4856_v27 = vpop.f32.mrb[156].mxu0  ;;  %v3469_v29 = vadd.f32 %v3468_v26, %v3130_v6 }
 0x216   :  { %v2322_v33 = vpop.f32.mrb[157].mxu0  ;;  %v2331_v21 = vadd.f32 %v6334_v22, %v4856_v27 }
 0x217   :  { %v2323_v34 = vadd.f32 %v6334_v22, %v2322_v33  ;;  %5037 = vmatpush3.bf16.msra.mxu1 %v5244_v24  ;;  %v4857_v39 = vpop.f32.mrb[158].mxu0  ;;  %v3470_v41 = vadd.f32 %v3469_v29, %v3131_v30 }
 0x218   :  { %v2325_v43 = vpop.f32.mrb[159].mxu0  ;;  %5038 = vmatprep.subr.bf16.mxu1 %v5297_v38  ;;  %v2334_v51 = vadd.f32 %v6334_v22, %v4857_v39  ;;  %v3135_v48 = vmax.f32 %v2331_v21, 0.0 }
 0x219   :  { %v3133_v32 = vmax.f32 %v2323_v34, 0.0  ;;  %v2326_v45 = vadd.f32 %v6334_v22, %v2325_v43  ;;  %v3471_v46 = vadd.f32 %v3470_v41, %v3132_v28 }
 0x21a   :  { %v3136_v56 = vmax.f32 %v2334_v51, 0.0 }
 0x21b   :  { %v3134_v52 = vmax.f32 %v2326_v45, 0.0  ;;  %5039 = vmatpush3.bf16.msra.mxu1 %v5245_v0  ;;  %v3472_v53 = vadd.f32 %v3471_v46, %v3133_v32 }
 0x21d   :  { %v4860_v54 = vpop.f32.mrb[160].mxu0  ;;  %v3473_v59 = vadd.f32 %v3472_v53, %v3134_v52 }
 0x21e   :  { %5041 = vmatmul.mubr.bf16.vlgmr.msra.gmra.mrb[152].mxu1 %v3835_v50  ;;  %v2338_v47 = vpop.f32.mrb[161].mxu0  ;;  %v2347_v61 = vadd.f32 %v6334_v22, %v4860_v54 }
 0x21f   :  { %v2339_v38 = vadd.f32 %v6334_v22, %v2338_v47  ;;  %v4861_v36 = vpop.f32.mrb[162].mxu0  ;;  %v3474_v3 = vadd.f32 %v3473_v59, %v3135_v48 }
 0x220   :  { %v2341_v5 = vpop.f32.mrb[163].mxu0  ;;  %v2350_v7 = vadd.f32 %v6334_v22, %v4861_v36  ;;  %v3139_v10 = vmax.f32 %v2347_v61, 0.0 }
 0x221   :  { %v3137_v57 = vmax.f32 %v2339_v38, 0.0  ;;  %v2342_v9 = vadd.f32 %v6334_v22, %v2341_v5  ;;  %v3475_v40 = vadd.f32 %v3474_v3, %v3136_v56 }
 0x222   :  { %v3140_v13 = vmax.f32 %v2350_v7, 0.0 }
 0x223   :  { %v3138_v1 = vmax.f32 %v2342_v9, 0.0  ;;  %v3476_v12 = vrot.slane %v3475_v40, 4 }
 0x225   :  { %v3482_v14 = vadd.f32 %v3138_v1, %v3137_v57  ;;  %v4864_v16 = vpop.f32.mrb[164].mxu0  ;;  %v3477_v17 = vadd.f32 %v3476_v12, %v3475_v40 }
 0x226   :  { %v2354_v18 = vpop.f32.mrb[165].mxu0  ;;  %v2363_v23 = vadd.f32 %v6334_v22, %v4864_v16 }
 0x227   :  { %v3483_v20 = vadd.f32 %v3482_v14, %v3139_v10  ;;  %v2355_v42 = vadd.f32 %v6334_v22, %v2354_v18  ;;  %v4865_v2 = vpop.f32.mrb[166].mxu0  ;;  %v3478_v6 = vrot.slane %v3477_v17, 2 }
 0x228   :  { %v2357_v24 = vpop.f32.mrb[167].mxu0  ;;  %v2366_v27 = vadd.f32 %v6334_v22, %v4865_v2  ;;  %v3143_v31 = vmax.f32 %v2363_v23, 0.0 }
 0x229   :  { %v3141_v30 = vmax.f32 %v2355_v42, 0.0  ;;  %v3484_v26 = vadd.f32 %v3483_v20, %v3140_v13  ;;  %v2358_v28 = vadd.f32 %v6334_v22, %v2357_v24  ;;  %v3479_v29 = vadd.f32 %v3478_v6, %v3477_v17 }
 0x22a   :  { %v3144_v0 = vmax.f32 %v2366_v27, 0.0 }
 0x22b   :  { %v3485_v33 = vadd.f32 %v3484_v26, %v3141_v30  ;;  %v3142_v34 = vmax.f32 %v2358_v28, 0.0  ;;  %v3480_v39 = vrot.slane %v3479_v29, 1 }
 0x22d   :  { %v3486_v41 = vadd.f32 %v3485_v33, %v3142_v34  ;;  %v4868_v21 = vpop.f32.mrb[168].mxu0  ;;  %v3481_v43 = vadd.f32 %v3480_v39, %v3479_v29 }
 0x22e   :  { %v2370_v32 = vpop.f32.mrb[169].mxu0  ;;  %v2379_v50 = vadd.f32 %v6334_v22, %v4868_v21  ;;  %v2419_v21 = vadd.f32 %v6334_v22, %v5814_v58  ;;  %v2435_v58 = vadd.f32 %v6334_v22, %v5842_v15  ;;  %v2451_v15 = vadd.f32 %v6334_v22, %v5870_v37 }
 0x22f   :  { %v3487_v45 = vadd.f32 %v3486_v41, %v3143_v31  ;;  %v2371_v46 = vadd.f32 %v6334_v22, %v2370_v32  ;;  %v4869_v51 = vpop.f32.mrb[170].mxu0  ;;  %v3672_v52 = vmul.f32 0.00390625, %v3481_v43 }
 0x230   :  { %v2373_v48 = vpop.f32.mrb[171].mxu0  ;;  %v2382_v56 = vadd.f32 %v6334_v22, %v4869_v51  ;;  %v3147_v61 = vmax.f32 %v2379_v50, 0.0  ;;  %v3157_v51 = vmax.f32 %v2419_v21, 0.0 }
 0x231   :  { %v3145_v53 = vmax.f32 %v2371_v46, 0.0  ;;  %v3488_v54 = vadd.f32 %v3487_v45, %v3144_v0  ;;  %v2374_v59 = vadd.f32 %v6334_v22, %v2373_v48  ;;  %v6478_v47 = vsel %vm3694_vm8, %v3672_v52, %v6403_v63 }
 0x232   :  { %v3148_v3 = vmax.f32 %v2382_v56, 0.0  ;;  %v2422_v45 = vadd.f32 %v6334_v22, %v5832_v4  ;;  %v2427_v46 = vadd.f32 %v6334_v22, %v5807_v55  ;;  %v2430_v48 = vadd.f32 %v6334_v22, %v5822_v62 }
 0x233   :  { %v3489_v38 = vadd.f32 %v3488_v54, %v3145_v53  ;;  %v3146_v36 = vmax.f32 %v2374_v59, 0.0  ;;  %v2438_v4 = vadd.f32 %v6334_v22, %v5859_v25  ;;  %v2443_v55 = vadd.f32 %v6334_v22, %v5840_v11 }
 0x234   :  { %v3158_v53 = vmax.f32 %v2422_v45, 0.0  ;;  %v3159_v56 = vmax.f32 %v2427_v46, 0.0  ;;  %v2446_v62 = vadd.f32 %v6334_v22, %v5850_v19  ;;  %v2454_v25 = vadd.f32 %v6334_v22, %v5887_v49 }
 0x235   :  { %v3490_v5 = vadd.f32 %v3489_v38, %v3146_v36  ;;  %v4872_v57 = vpop.f32.mrb[172].mxu0  ;;  %v3161_v36 = vmax.f32 %v2435_v58, 0.0  ;;  %v2459_v11 = vadd.f32 %v6334_v22, %v5868_v35  ;;  %v3587_v19 = vrot.slane %v6254_v8, 4 }
 0x236   :  { %v2386_v7 = vpop.f32.mrb[173].mxu0  ;;  %v2395_v40 = vadd.f32 %v6334_v22, %v4872_v57 }
 0x237   :  { %v3491_v9 = vadd.f32 %v3490_v5, %v3147_v61  ;;  %v2387_v10 = vadd.f32 %v6334_v22, %v2386_v7  ;;  %v4873_v1 = vpop.f32.mrb[174].mxu0  ;;  %v3160_v61 = vmax.f32 %v2430_v48, 0.0  ;;  %v3162_v5 = vmax.f32 %v2438_v4, 0.0 }
 0x238   :  { %v2389_v12 = vpop.f32.mrb[175].mxu0  ;;  %v2398_v16 = vadd.f32 %v6334_v22, %v4873_v1  ;;  %v3151_v17 = vmax.f32 %v2395_v40, 0.0  ;;  %v3163_v7 = vmax.f32 %v2443_v55, 0.0  ;;  %v3164_v40 = vmax.f32 %v2446_v62, 0.0 }
 0x239   :  { %v3149_v13 = vmax.f32 %v2387_v10, 0.0  ;;  %v3492_v14 = vadd.f32 %v3491_v9, %v3148_v3  ;;  %v2390_v63 = vadd.f32 %v6334_v22, %v2389_v12  ;;  %v3550_v1 = vrot.slane %v6080_v60, 4 }
 0x23a   :  { %v3152_v23 = vmax.f32 %v2398_v16, 0.0  ;;  %v3165_v12 = vmax.f32 %v2451_v15, 0.0  ;;  %v3166_v16 = vmax.f32 %v2454_v25, 0.0  ;;  %v3588_v49 = vadd.f32 %v3587_v19, %v6254_v8 }
 0x23b   :  { %v3493_v18 = vadd.f32 %v3492_v14, %v3149_v13  ;;  %v3150_v20 = vmax.f32 %v2390_v63, 0.0  ;;  %v2462_v14 = vadd.f32 %v6334_v22, %v5878_v44  ;;  %v3551_v63 = vadd.f32 %v3550_v1, %v6080_v60 }
 0x23d   :  { %v3494_v42 = vadd.f32 %v3493_v18, %v3150_v20  ;;  %v4876_v2 = vpop.f32.mrb[176].mxu0  ;;  %v3168_v20 = vmax.f32 %v2462_v14, 0.0 }
 0x23e   :  { %v2402_v6 = vpop.f32.mrb[177].mxu0  ;;  %v2411_v30 = vadd.f32 %v6334_v22, %v4876_v2  ;;  %v3589_v2 = vrot.slane %v3588_v49, 2 }
 0x23f   :  { %v3495_v24 = vadd.f32 %v3494_v42, %v3151_v17  ;;  %v2403_v26 = vadd.f32 %v6334_v22, %v2402_v6  ;;  %v4877_v27 = vpop.f32.mrb[178].mxu0  ;;  %v3167_v17 = vmax.f32 %v2459_v11, 0.0  ;;  %v3552_v42 = vrot.slane %v3551_v63, 2 }
 0x240   :  { %v2405_v28 = vpop.f32.mrb[179].mxu0  ;;  %v2414_v33 = vadd.f32 %v6334_v22, %v4877_v27  ;;  %v3155_v39 = vmax.f32 %v2411_v30, 0.0  ;;  %v3590_v30 = vadd.f32 %v3589_v2, %v3588_v49 }
 0x241   :  { %v3153_v29 = vmax.f32 %v2403_v26, 0.0  ;;  %v3496_v31 = vadd.f32 %v3495_v24, %v3152_v23  ;;  %v2406_v34 = vadd.f32 %v6334_v22, %v2405_v28  ;;  %v3553_v24 = vadd.f32 %v3552_v42, %v3551_v63 }
 0x242   :  { %v3156_v43 = vmax.f32 %v2414_v33, 0.0  ;;  %v3591_v22 = vrot.slane %v3590_v30, 1 }
 0x243   :  { %v3497_v0 = vadd.f32 %v3496_v31, %v3153_v29  ;;  %v3154_v41 = vmax.f32 %v2406_v34, 0.0  ;;  %v3554_v28 = vrot.slane %v3553_v24, 1 }
 0x244   :  { %v3592_v33 = vadd.f32 %v3591_v22, %v3590_v30 }
 0x245   :  { %v3498_v32 = vadd.f32 %v3497_v0, %v3154_v41  ;;  %v3555_v31 = vadd.f32 %v3554_v28, %v3553_v24 }
 0x247   :  { %v3499_v50 = vadd.f32 %v3498_v32, %v3155_v39  ;;  %v3674_v34 = vmul.f32 0.00390625, %v3555_v31  ;;  %v3675_v39 = vmul.f32 0.00390625, %v3592_v33 }
 0x249   :  { %v3500_v52 = vadd.f32 %v3499_v50, %v3156_v43 }
 0x24b   :  { %v3501_v54 = vadd.f32 %v3500_v52, %v3157_v51 }
 0x24d   :  { %v3502_v59 = vadd.f32 %v3501_v54, %v3158_v53 }
 0x24f   :  { %v3503_v38 = vadd.f32 %v3502_v59, %v3159_v56 }
 0x251   :  { %v3504_v3 = vadd.f32 %v3503_v38, %v3160_v61 }
 0x253   :  { %v3505_v57 = vadd.f32 %v3504_v3, %v3161_v36 }
 0x255   :  { %v3506_v9 = vadd.f32 %v3505_v57, %v3162_v5 }
 0x257   :  { %v3507_v10 = vadd.f32 %v3506_v9, %v3163_v7 }
 0x259   :  { %v3508_v13 = vadd.f32 %v3507_v10, %v3164_v40 }
 0x25b   :  { %v3509_v37 = vadd.f32 %v3508_v13, %v3165_v12 }
 0x25d   :  { %v3510_v18 = vadd.f32 %v3509_v37, %v3166_v16 }
 0x25f   :  { %v3511_v23 = vadd.f32 %v3510_v18, %v3167_v17 }
 0x261   :  { %v3512_v35 = vadd.f32 %v3511_v23, %v3168_v20 }
 0x263   :  { %v3513_v6 = vrot.slane %v3512_v35, 4 }
 0x265   :  { %v3514_v26 = vadd.f32 %v3513_v6, %v3512_v35 }
 0x267   :  { %v3515_v27 = vrot.slane %v3514_v26, 2 }
 0x269   :  { %v3516_v44 = vadd.f32 %v3515_v27, %v3514_v26 }
 0x26b   :  { %v3517_v29 = vrot.slane %v3516_v44, 1 }
 0x26d   :  { %v3518_v60 = vadd.f32 %v3517_v29, %v3516_v44 }
 0x26f   :  { %v3673_v8 = vmul.f32 0.00390625, %v3518_v60 }
 0x271   :  { %v3697_v0 = vsel %vm3696_vm9, %v3673_v8, %v6478_v47 }
 0x272   :  { %v3699_v41 = vsel %vm3698_vm10, %v3674_v34, %v3697_v0 }
 0x273   :  { %v3701_v21 = vsel %vm3700_vm11, %v3675_v39, %v3699_v41 }
 0x274   :  { %3705 = vst [vmem:[#allocation2] sm:$0xff] %v3701_v21 }
 0x275   :  { %5259 = shalt.err (!%p5256_p4)
}
 0x276   :  { %s5260_s15 = scalar_lea.hbm %s6552_s8, 256 }
 0x277   :  { %p5261_p5 = scmp.ne.s32.totalorder %s6552_s8, %s5260_s15  ;;  %p5264_p6 = scmp.lt.u32.totalorder %s5260_s15, %s6552_s8 }
 0x279   :  { %p5266_p7 = pnand %p5264_p6, %p5261_p5 }
 0x27b   :  { %5269 = shalt.err (!%p5266_p7)
}
 0x27c   :  { %s5301_s2 = smov 128   ;;  %s5302_s19 = smov 8   ;;  %v4474_v46 = vld [vmem:[%s6551_s7] ss:$0 sm:$0xff] }
 0x27d   :  { %4127 = dma.vmem_to_hbm [thread:$0]  %s4122_s11, 256, %s6552_s8, [#allocation3], %s5301_s2, %s5301_s2, %s5302_s19  }
 0x27e   :  { %s5303_s3 = smov [#allocation4]  }
 0x27f   :  { %s4134_s4 = sshll.u32 %s5303_s3, 4  ;;  %s4135_s4 = int_to_ptr.vmem [resolvable:$true] %s4134_s4 }
 0x280   :  { %s5270_s8 = scalar_lea.vmem %s4135_s4, 32  ;;  %p5275_p9 = scmp.lt.s32.totalorder %s4135_s4, %s4135_s4 }
 0x281   :  { %p5271_p8 = scmp.ne.s32.totalorder %s4135_s4, %s5270_s8  ;;  %p5276_p10 = scmp.lt.s32.totalorder %s5270_s8, %s5270_s8 }
 0x283   :  { %p5277_p11 = por %p5276_p10, %p5275_p9 }
 0x285   :  { %p5278_p12 = pnand %p5277_p11, %p5271_p8 }
 0x2d1   :  { %v4679_v47 = vpop.f32.mrb[148].mxu1 }
 0x2d2   :  { %v4680_v43 = vpop.f32.mrb[149].mxu1 }
 0x2d3   :  { %v4681_v32 = vadd.f32 %v4680_v43, %v4679_v47  ;;  %v4682_v45 = vpop.f32.mrb[150].mxu1 }
 0x2d4   :  { %v4683_v50 = vpop.f32.mrb[151].mxu1 }
 0x2d5   :  { %v4070_v51 = vadd.f32 %v4681_v32, %v4474_v46 }
 0x2f1   :  { %v4109_v52 = vpop.f32.mrb[152].mxu1 }
 0x2f2   :  { %v4110_v48 = vadd.f32 %v4109_v52, %v4070_v51  ;;  %v5042_v53 = vpop.f32.mrb[153].mxu1 }
 0x2f3   :  { %v4112_v54 = vpop.f32.mrb[154].mxu1 }
 0x2f4   :  { %4115 = vst [vmem:[#allocation4] sm:$0x3] %v4110_v48  ;;  %v5043_v56 = vpop.f32.mrb[155].mxu1 }
 0x2f5   :  { %5281 = shalt.err (!%p5278_p12)
}
 0x2f6   :  { %s5282_s7 = scalar_lea.hbm %s6553_s9, 32 }
 0x2f7   :  { %p5283_p13 = scmp.ne.s32.totalorder %s6553_s9, %s5282_s7  ;;  %p5286_p0 = scmp.lt.u32.totalorder %s5282_s7, %s6553_s9 }
 0x2f9   :  { %p5288_p1 = pnand %p5286_p0, %p5283_p13 }
 0x2fb   :  { %5291 = shalt.err (!%p5288_p1)
}
 0x2fc   :  { %4137 = dma.vmem_to_hbm [thread:$0]  %s4135_s4, 32, %s6553_s9, [#allocation5]  }
 0x2fd   :  { %5292 = dma.done.wait [#allocation3], 256  }
 0x2fe   :  { %5293 = vsyncadd [#allocation3], 4294967040 }
 0x2ff   :  { %5294 = dma.done.wait [#allocation5], 32  }
 0x300   :  { %5295 = vsyncadd [#allocation5], 4294967264 }
 0x301   :  { %4144 = vsyncpa [#allocation3], 1 }
 0x302   :  { %4145 = vsyncpa [#allocation5], 1 }

</bundles_post_ra>
